<compile_context>
chip_gen: v5e
topology: v5e:2x2
jax: 0.10.0
libtpu: 0.0.40
codegen_flags: <defaults>
</compile_context>

<pallas_src>
import functools

import numpy as np
import jax
import jax.numpy as jnp
from jax.experimental import pallas as pl
from jax.experimental.pallas import tpu as pltpu


def _round_up(v, m):
    return (v + m - 1) // m * m


# ----------------------------------------------------------------------------
# Fused kernel: 3x3 conv (9 shifted-slice MXU matmuls, bf16 in / f32 acc)
#               + BatchNorm (batch stats) + activation + residual add
# ----------------------------------------------------------------------------
def _dcn_block_kernel(x_ref, w_ref, g_ref, b_ref, mask_ref, o_ref, *,
                      wp, m_out, inv_n, neg_slope, eps, act):
    cout = o_ref.shape[0]
    acc = jnp.zeros((cout, m_out), jnp.float32)

    # 3x3 conv: the contribution of tap (dy, dx) at flat output base f comes
    # from the padded input at flat index f + dy*Wp + dx, i.e. a static lane
    # slice of the padded slab.  bf16 MXU matmul, f32 accumulation.
    t = 0
    for dy in range(3):
        for dx in range(3):
            off = dy * wp + dx
            xs = x_ref[:, pl.ds(off, m_out)].astype(jnp.bfloat16)
            acc = acc + jnp.dot(w_ref[t], xs,
                                preferred_element_type=jnp.float32)
            t += 1

    # BatchNorm, training-mode batch statistics over the valid positions.
    # Single pass: var = E[y^2] - E[y]^2.  (Conv bias omitted: the mean
    # subtraction cancels it exactly.)
    valid = mask_ref[...] > 0.0                               # (1, M)
    ym = jnp.where(valid, acc, 0.0)
    mean = jnp.sum(ym, axis=1, keepdims=True) * inv_n         # (Cout, 1)
    ex2 = jnp.sum(ym * ym, axis=1, keepdims=True) * inv_n
    var = ex2 - mean * mean
    y = (acc - mean) * jax.lax.rsqrt(var + eps)
    y = y * g_ref[...] + b_ref[...]

    if act == "leaky":
        y = jnp.where(y >= 0.0, y, neg_slope * y)             # LeakyReLU(0.2)
    elif act == "relu":
        y = jnp.maximum(y, 0.0)

    # Residual add fused in: the centre-tap (dy=1, dx=1) slice of the padded
    # f32 input slab is exactly x.
    o_ref[...] = y + x_ref[:, pl.ds(wp + 1, m_out)]


# ----------------------------------------------------------------------------
# Wrapper (layout plumbing NCHW <-> lane-dense (C, M) slab)
# ----------------------------------------------------------------------------
def dcn_block(x, weight, gamma, beta, *, act="leaky", negative_slope=0.2,
              eps=1e-5):
    """y = act(BN(conv3x3(x, weight))) + x   for NCHW x, OIHW weight."""
    n, c, h, w = x.shape
    cout, cin, kh, kw = weight.shape
    assert (cin, kh, kw) == (c, 3, 3) and cout == c, \
        "DCNBlock residual requires input_channel == output_channel, k=3"

    hp, wp = h + 2, w + 2
    m_raw = n * hp * wp
    m_out = _round_up(m_raw, 128)                 # lane-dense output width
    m_in = _round_up(m_out + 2 * wp + 2, 128)     # room for the largest shift

    # Channel-major, zero-padded, batch+spatially-flattened slab (C, M_in).
    xp = jnp.pad(x, ((0, 0), (0, 0), (1, 1), (1, 1)))
    xf = jnp.transpose(xp, (1, 0, 2, 3)).reshape(c, m_raw)
    xf = jnp.pad(xf, ((0, 0), (0, m_in - m_raw)))

    # Conv taps as (9, Cout, Cin) in bf16.
    wt = jnp.transpose(weight, (2, 3, 0, 1)).reshape(9, cout, cin)
    wt = wt.astype(jnp.bfloat16)

    # Static validity mask: 1 at flat base n*Hp*Wp + y*Wp + x with y<H, x<W.
    valid_idx = (np.arange(n)[:, None, None] * (hp * wp)
                 + np.arange(h)[None, :, None] * wp
                 + np.arange(w)[None, None, :]).reshape(-1)
    mask_np = np.zeros((1, m_out), np.float32)
    mask_np[0, valid_idx] = 1.0
    mask = jnp.asarray(mask_np)

    kernel = functools.partial(
        _dcn_block_kernel, wp=wp, m_out=m_out, inv_n=1.0 / float(n * h * w),
        neg_slope=negative_slope, eps=eps, act=act)

    out_flat = pl.pallas_call(
        kernel,
        out_shape=jax.ShapeDtypeStruct((cout, m_out), jnp.float32),
        compiler_params=pltpu.CompilerParams(vmem_limit_bytes=32 * 1024 * 1024),
    )(xf, wt,
      gamma.reshape(cout, 1).astype(jnp.float32),
      beta.reshape(cout, 1).astype(jnp.float32),
      mask)

    # Back to NCHW: keep only the valid bases (layout plumbing, not compute).
    out = out_flat[:, :m_raw].reshape(c, n, hp, wp)[:, :, :h, :w]
    return jnp.transpose(out, (1, 0, 2, 3))


# ----------------------------------------------------------------------------
# Pure-JAX reference (for a sanity check against the fused kernel)
# ----------------------------------------------------------------------------
def dcn_block_ref(x, weight, gamma, beta, *, act="leaky", negative_slope=0.2,
                  eps=1e-5):
    y = jax.lax.conv_general_dilated(
        x, weight, window_strides=(1, 1), padding=((1, 1), (1, 1)),
        dimension_numbers=("NCHW", "OIHW", "NCHW"))
    mean = jnp.mean(y, axis=(0, 2, 3), keepdims=True)
    var = jnp.mean(jnp.square(y - mean), axis=(0, 2, 3), keepdims=True)
    yn = (y - mean) * jax.lax.rsqrt(var + eps)
    yn = yn * gamma.reshape(1, -1, 1, 1) + beta.reshape(1, -1, 1, 1)
    if act == "leaky":
        yn = jnp.where(yn >= 0.0, yn, negative_slope * yn)
    elif act == "relu":
        yn = jnp.maximum(yn, 0.0)
    return yn + x


# ----------------------------------------------------------------------------
# Main
# ----------------------------------------------------------------------------
if __name__ == "__main__":
    N, C, H, W = 2, 32, 16, 16

    root = jax.random.PRNGKey(0)
    kx, kw, kg, kb = jax.random.split(root, 4)
    x = jax.random.normal(kx, (N, C, H, W), jnp.float32)
    weight = jax.random.normal(kw, (C, C, 3, 3), jnp.float32) / np.sqrt(C * 9)
    gamma = 1.0 + 0.1 * jax.random.normal(kg, (C,), jnp.float32)
    beta = 0.1 * jax.random.normal(kb, (C,), jnp.float32)

    fwd = jax.jit(functools.partial(dcn_block, act="leaky"))
    out = fwd(x, weight, gamma, beta)
    jax.block_until_ready(out)

    ref = jax.jit(functools.partial(dcn_block_ref, act="leaky"))(
        x, weight, gamma, beta)
    jax.block_until_ready(ref)

    assert out.shape == (N, C, H, W)
    assert bool(jnp.isfinite(out).all())
    max_err = float(jnp.max(jnp.abs(out - ref)))
    mean_err = float(jnp.mean(jnp.abs(out - ref)))
    # bf16 MXU operands vs (possibly) f32 reference conv -> loose tolerance.
    assert max_err < 0.15, f"max_err={max_err}"
    assert mean_err < 0.02, f"mean_err={mean_err}"

    print("KERNEL_OK")
</pallas_src>

<mosaic_0001>
module attributes {stable_mosaic.version = 11 : i64} {
  func.func @_dcn_block_kernel(%arg0: memref<32x896xf32, #tpu.memory_space<vmem>>, %arg1: memref<9x32x32xbf16, #tpu.memory_space<vmem>>, %arg2: memref<32x1xf32, #tpu.memory_space<vmem>>, %arg3: memref<32x1xf32, #tpu.memory_space<vmem>>, %arg4: memref<1x768xf32, #tpu.memory_space<vmem>>, %arg5: memref<32x768xf32, #tpu.memory_space<vmem>>) attributes {dimension_semantics = [], scalar_prefetch = 0 : i64, scratch_operands = 0 : i64, tpu.core_type = #tpu.core_type<tc>} {
    %cst = arith.constant 0.000000e+00 : f32
    %0 = vector.broadcast %cst : f32 to vector<32x768xf32>
    %c0 = arith.constant 0 : index
    %c0_0 = arith.constant 0 : index
    %1 = vector.load %arg0[%c0, %c0_0] : memref<32x896xf32, #tpu.memory_space<vmem>>, vector<32x768xf32>
    %2 = arith.truncf %1 : vector<32x768xf32> to vector<32x768xbf16>
    %c0_1 = arith.constant 0 : index
    %c0_2 = arith.constant 0 : index
    %c0_3 = arith.constant 0 : index
    %3 = vector.load %arg1[%c0_1, %c0_2, %c0_3] : memref<9x32x32xbf16, #tpu.memory_space<vmem>>, vector<1x32x32xbf16>
    %4 = vector.shape_cast %3 : vector<1x32x32xbf16> to vector<32x32xbf16>
    %cst_4 = arith.constant dense<0.000000e+00> : vector<32x768xf32>
    %5 = tpu.matmul %4, %2, %cst_4 {dimension_numbers = #tpu.dot_dimension_numbers<[1], [0], [0], [1], [0, 0, 1, 1], [], []>} : vector<32x32xbf16>, vector<32x768xbf16>, vector<32x768xf32> -> vector<32x768xf32>
    %6 = arith.addf %0, %5 : vector<32x768xf32>
    %c0_5 = arith.constant 0 : index
    %c1 = arith.constant 1 : index
    %7 = vector.load %arg0[%c0_5, %c1] : memref<32x896xf32, #tpu.memory_space<vmem>>, vector<32x768xf32>
    %8 = arith.truncf %7 : vector<32x768xf32> to vector<32x768xbf16>
    %c1_6 = arith.constant 1 : index
    %c0_7 = arith.constant 0 : index
    %c0_8 = arith.constant 0 : index
    %9 = vector.load %arg1[%c1_6, %c0_7, %c0_8] : memref<9x32x32xbf16, #tpu.memory_space<vmem>>, vector<1x32x32xbf16>
    %10 = vector.shape_cast %9 : vector<1x32x32xbf16> to vector<32x32xbf16>
    %cst_9 = arith.constant dense<0.000000e+00> : vector<32x768xf32>
    %11 = tpu.matmul %10, %8, %cst_9 {dimension_numbers = #tpu.dot_dimension_numbers<[1], [0], [0], [1], [0, 0, 1, 1], [], []>} : vector<32x32xbf16>, vector<32x768xbf16>, vector<32x768xf32> -> vector<32x768xf32>
    %12 = arith.addf %6, %11 : vector<32x768xf32>
    %c0_10 = arith.constant 0 : index
    %c2 = arith.constant 2 : index
    %13 = vector.load %arg0[%c0_10, %c2] : memref<32x896xf32, #tpu.memory_space<vmem>>, vector<32x768xf32>
    %14 = arith.truncf %13 : vector<32x768xf32> to vector<32x768xbf16>
    %c2_11 = arith.constant 2 : index
    %c0_12 = arith.constant 0 : index
    %c0_13 = arith.constant 0 : index
    %15 = vector.load %arg1[%c2_11, %c0_12, %c0_13] : memref<9x32x32xbf16, #tpu.memory_space<vmem>>, vector<1x32x32xbf16>
    %16 = vector.shape_cast %15 : vector<1x32x32xbf16> to vector<32x32xbf16>
    %cst_14 = arith.constant dense<0.000000e+00> : vector<32x768xf32>
    %17 = tpu.matmul %16, %14, %cst_14 {dimension_numbers = #tpu.dot_dimension_numbers<[1], [0], [0], [1], [0, 0, 1, 1], [], []>} : vector<32x32xbf16>, vector<32x768xbf16>, vector<32x768xf32> -> vector<32x768xf32>
    %18 = arith.addf %12, %17 : vector<32x768xf32>
    %c0_15 = arith.constant 0 : index
    %c18 = arith.constant 18 : index
    %19 = vector.load %arg0[%c0_15, %c18] : memref<32x896xf32, #tpu.memory_space<vmem>>, vector<32x768xf32>
    %20 = arith.truncf %19 : vector<32x768xf32> to vector<32x768xbf16>
    %c3 = arith.constant 3 : index
    %c0_16 = arith.constant 0 : index
    %c0_17 = arith.constant 0 : index
    %21 = vector.load %arg1[%c3, %c0_16, %c0_17] : memref<9x32x32xbf16, #tpu.memory_space<vmem>>, vector<1x32x32xbf16>
    %22 = vector.shape_cast %21 : vector<1x32x32xbf16> to vector<32x32xbf16>
    %cst_18 = arith.constant dense<0.000000e+00> : vector<32x768xf32>
    %23 = tpu.matmul %22, %20, %cst_18 {dimension_numbers = #tpu.dot_dimension_numbers<[1], [0], [0], [1], [0, 0, 1, 1], [], []>} : vector<32x32xbf16>, vector<32x768xbf16>, vector<32x768xf32> -> vector<32x768xf32>
    %24 = arith.addf %18, %23 : vector<32x768xf32>
    %c0_19 = arith.constant 0 : index
    %c19 = arith.constant 19 : index
    %25 = vector.load %arg0[%c0_19, %c19] : memref<32x896xf32, #tpu.memory_space<vmem>>, vector<32x768xf32>
    %26 = arith.truncf %25 : vector<32x768xf32> to vector<32x768xbf16>
    %c4 = arith.constant 4 : index
    %c0_20 = arith.constant 0 : index
    %c0_21 = arith.constant 0 : index
    %27 = vector.load %arg1[%c4, %c0_20, %c0_21] : memref<9x32x32xbf16, #tpu.memory_space<vmem>>, vector<1x32x32xbf16>
    %28 = vector.shape_cast %27 : vector<1x32x32xbf16> to vector<32x32xbf16>
    %cst_22 = arith.constant dense<0.000000e+00> : vector<32x768xf32>
    %29 = tpu.matmul %28, %26, %cst_22 {dimension_numbers = #tpu.dot_dimension_numbers<[1], [0], [0], [1], [0, 0, 1, 1], [], []>} : vector<32x32xbf16>, vector<32x768xbf16>, vector<32x768xf32> -> vector<32x768xf32>
    %30 = arith.addf %24, %29 : vector<32x768xf32>
    %c0_23 = arith.constant 0 : index
    %c20 = arith.constant 20 : index
    %31 = vector.load %arg0[%c0_23, %c20] : memref<32x896xf32, #tpu.memory_space<vmem>>, vector<32x768xf32>
    %32 = arith.truncf %31 : vector<32x768xf32> to vector<32x768xbf16>
    %c5 = arith.constant 5 : index
    %c0_24 = arith.constant 0 : index
    %c0_25 = arith.constant 0 : index
    %33 = vector.load %arg1[%c5, %c0_24, %c0_25] : memref<9x32x32xbf16, #tpu.memory_space<vmem>>, vector<1x32x32xbf16>
    %34 = vector.shape_cast %33 : vector<1x32x32xbf16> to vector<32x32xbf16>
    %cst_26 = arith.constant dense<0.000000e+00> : vector<32x768xf32>
    %35 = tpu.matmul %34, %32, %cst_26 {dimension_numbers = #tpu.dot_dimension_numbers<[1], [0], [0], [1], [0, 0, 1, 1], [], []>} : vector<32x32xbf16>, vector<32x768xbf16>, vector<32x768xf32> -> vector<32x768xf32>
    %36 = arith.addf %30, %35 : vector<32x768xf32>
    %c0_27 = arith.constant 0 : index
    %c36 = arith.constant 36 : index
    %37 = vector.load %arg0[%c0_27, %c36] : memref<32x896xf32, #tpu.memory_space<vmem>>, vector<32x768xf32>
    %38 = arith.truncf %37 : vector<32x768xf32> to vector<32x768xbf16>
    %c6 = arith.constant 6 : index
    %c0_28 = arith.constant 0 : index
    %c0_29 = arith.constant 0 : index
    %39 = vector.load %arg1[%c6, %c0_28, %c0_29] : memref<9x32x32xbf16, #tpu.memory_space<vmem>>, vector<1x32x32xbf16>
    %40 = vector.shape_cast %39 : vector<1x32x32xbf16> to vector<32x32xbf16>
    %cst_30 = arith.constant dense<0.000000e+00> : vector<32x768xf32>
    %41 = tpu.matmul %40, %38, %cst_30 {dimension_numbers = #tpu.dot_dimension_numbers<[1], [0], [0], [1], [0, 0, 1, 1], [], []>} : vector<32x32xbf16>, vector<32x768xbf16>, vector<32x768xf32> -> vector<32x768xf32>
    %42 = arith.addf %36, %41 : vector<32x768xf32>
    %c0_31 = arith.constant 0 : index
    %c37 = arith.constant 37 : index
    %43 = vector.load %arg0[%c0_31, %c37] : memref<32x896xf32, #tpu.memory_space<vmem>>, vector<32x768xf32>
    %44 = arith.truncf %43 : vector<32x768xf32> to vector<32x768xbf16>
    %c7 = arith.constant 7 : index
    %c0_32 = arith.constant 0 : index
    %c0_33 = arith.constant 0 : index
    %45 = vector.load %arg1[%c7, %c0_32, %c0_33] : memref<9x32x32xbf16, #tpu.memory_space<vmem>>, vector<1x32x32xbf16>
    %46 = vector.shape_cast %45 : vector<1x32x32xbf16> to vector<32x32xbf16>
    %cst_34 = arith.constant dense<0.000000e+00> : vector<32x768xf32>
    %47 = tpu.matmul %46, %44, %cst_34 {dimension_numbers = #tpu.dot_dimension_numbers<[1], [0], [0], [1], [0, 0, 1, 1], [], []>} : vector<32x32xbf16>, vector<32x768xbf16>, vector<32x768xf32> -> vector<32x768xf32>
    %48 = arith.addf %42, %47 : vector<32x768xf32>
    %c0_35 = arith.constant 0 : index
    %c38 = arith.constant 38 : index
    %49 = vector.load %arg0[%c0_35, %c38] : memref<32x896xf32, #tpu.memory_space<vmem>>, vector<32x768xf32>
    %50 = arith.truncf %49 : vector<32x768xf32> to vector<32x768xbf16>
    %c8 = arith.constant 8 : index
    %c0_36 = arith.constant 0 : index
    %c0_37 = arith.constant 0 : index
    %51 = vector.load %arg1[%c8, %c0_36, %c0_37] : memref<9x32x32xbf16, #tpu.memory_space<vmem>>, vector<1x32x32xbf16>
    %52 = vector.shape_cast %51 : vector<1x32x32xbf16> to vector<32x32xbf16>
    %cst_38 = arith.constant dense<0.000000e+00> : vector<32x768xf32>
    %53 = tpu.matmul %52, %50, %cst_38 {dimension_numbers = #tpu.dot_dimension_numbers<[1], [0], [0], [1], [0, 0, 1, 1], [], []>} : vector<32x32xbf16>, vector<32x768xbf16>, vector<32x768xf32> -> vector<32x768xf32>
    %54 = arith.addf %48, %53 : vector<32x768xf32>
    %c0_39 = arith.constant 0 : index
    %c0_40 = arith.constant 0 : index
    %55 = vector.load %arg4[%c0_39, %c0_40] : memref<1x768xf32, #tpu.memory_space<vmem>>, vector<1x768xf32>
    %cst_41 = arith.constant 0.000000e+00 : f32
    %56 = vector.broadcast %cst_41 : f32 to vector<1x768xf32>
    %57 = arith.cmpf ogt, %55, %56 : vector<1x768xf32>
    %cst_42 = arith.constant 0.000000e+00 : f32
    %58 = vector.shape_cast %57 : vector<1x768xi1> to vector<1x768xi1>
    %59 = vector.broadcast %58 : vector<1x768xi1> to vector<32x768xi1>
    %60 = vector.broadcast %cst_42 : f32 to vector<32x768xf32>
    %61 = arith.select %59, %54, %60 : vector<32x768xi1>, vector<32x768xf32>
    %cst_43 = arith.constant dense<0.000000e+00> : vector<32xf32>
    %62 = vector.multi_reduction <add>, %61, %cst_43 [1] : vector<32x768xf32> to vector<32xf32>
    %63 = vector.shape_cast %62 : vector<32xf32> to vector<32x1xf32>
    %cst_44 = arith.constant 0.001953125 : f32
    %64 = vector.broadcast %cst_44 : f32 to vector<32x1xf32>
    %65 = arith.mulf %63, %64 : vector<32x1xf32>
    %66 = arith.mulf %61, %61 : vector<32x768xf32>
    %cst_45 = arith.constant dense<0.000000e+00> : vector<32xf32>
    %67 = vector.multi_reduction <add>, %66, %cst_45 [1] : vector<32x768xf32> to vector<32xf32>
    %68 = vector.shape_cast %67 : vector<32xf32> to vector<32x1xf32>
    %cst_46 = arith.constant 0.001953125 : f32
    %69 = vector.broadcast %cst_46 : f32 to vector<32x1xf32>
    %70 = arith.mulf %68, %69 : vector<32x1xf32>
    %71 = arith.mulf %65, %65 : vector<32x1xf32>
    %72 = arith.subf %70, %71 : vector<32x1xf32>
    %73 = vector.broadcast %65 : vector<32x1xf32> to vector<32x768xf32>
    %74 = arith.subf %54, %73 : vector<32x768xf32>
    %cst_47 = arith.constant 9.99999974E-6 : f32
    %75 = vector.broadcast %cst_47 : f32 to vector<32x1xf32>
    %76 = arith.addf %72, %75 : vector<32x1xf32>
    %77 = math.rsqrt %76 : vector<32x1xf32>
    %78 = vector.broadcast %77 : vector<32x1xf32> to vector<32x768xf32>
    %79 = arith.mulf %74, %78 : vector<32x768xf32>
    %c0_48 = arith.constant 0 : index
    %c0_49 = arith.constant 0 : index
    %80 = vector.load %arg2[%c0_48, %c0_49] : memref<32x1xf32, #tpu.memory_space<vmem>>, vector<32x1xf32>
    %81 = vector.broadcast %80 : vector<32x1xf32> to vector<32x768xf32>
    %82 = arith.mulf %79, %81 : vector<32x768xf32>
    %c0_50 = arith.constant 0 : index
    %c0_51 = arith.constant 0 : index
    %83 = vector.load %arg3[%c0_50, %c0_51] : memref<32x1xf32, #tpu.memory_space<vmem>>, vector<32x1xf32>
    %84 = vector.broadcast %83 : vector<32x1xf32> to vector<32x768xf32>
    %85 = arith.addf %82, %84 : vector<32x768xf32>
    %cst_52 = arith.constant 0.000000e+00 : f32
    %86 = vector.broadcast %cst_52 : f32 to vector<32x768xf32>
    %87 = arith.cmpf oge, %85, %86 : vector<32x768xf32>
    %cst_53 = arith.constant 2.000000e-01 : f32
    %88 = vector.broadcast %cst_53 : f32 to vector<32x768xf32>
    %89 = arith.mulf %88, %85 : vector<32x768xf32>
    %90 = arith.select %87, %85, %89 : vector<32x768xi1>, vector<32x768xf32>
    %c0_54 = arith.constant 0 : index
    %c19_55 = arith.constant 19 : index
    %91 = vector.load %arg0[%c0_54, %c19_55] : memref<32x896xf32, #tpu.memory_space<vmem>>, vector<32x768xf32>
    %92 = arith.addf %90, %91 : vector<32x768xf32>
    %c0_56 = arith.constant 0 : index
    %c0_57 = arith.constant 0 : index
    %93 = vector.load %arg5[%c0_56, %c0_57] : memref<32x768xf32, #tpu.memory_space<vmem>>, vector<32x768xf32>
    tpu.vector_store %arg5[%c0_56, %c0_57], %92 {strides = array<i32>} : memref<32x768xf32, #tpu.memory_space<vmem>>, vector<32x768xf32>,
    return
  }
}

</mosaic_0001>

<bundles_post_ra>
// kernel: dcn_block.1
= control target key start
LH: loop header
LB: loop body
LE: loop exit
PB: predicated region body
PF: predicated region fallthrough
CT: control target
= control target key end

     0   :  { %s2782_s26 = smov 127   ;;  %s2783_s27 = smov 126   ;;  %vm160_vm0 = vcmask 1039360   ;;  %vm185_vm1 = vcmask 261120   ;;  %vm479_vm2 = vcmask 1031168   ;;  %vm691_vm3 = vcmask 900096   ;;  %s4582_s0 = inlined_call_operand.vmem [shape: f32[32,896], index: 0, kind: input, shape index: {}]   ;;  %s4583_s1 = inlined_call_operand.vmem [shape: bf16[9,32,32], index: 1, kind: input, shape index: {}]   ;;  %s4584_s2 = inlined_call_operand.vmem [shape: f32[32,1], index: 2, kind: input, shape index: {}]   ;;  %s4585_s3 = inlined_call_operand.vmem [shape: f32[32,1], index: 3, kind: input, shape index: {}]   ;;  %s4586_s4 = inlined_call_operand.vmem [shape: f32[1,768], index: 4, kind: input, shape index: {}]   ;;  %s4587_s5 = inlined_call_operand.vmem [shape: f32[32,768], index: 5, kind: output, shape index: {}]  }
   0x1   :  { %v77_v0 = vld [vmem:[%s4582_s0 + $0x80] sm:$0xff]  ;;  %v84_v1 = vld [vmem:[%s4582_s0 + $0xb8] sm:$0xff]  ;;  %v75_v2 = vld [vmem:[%s4582_s0 + $0x70] sm:$0xff]  ;;  %s2785_s28 = smov 109   ;;  %s2786_s8 = smov 108   ;;  %vm903_vm4 = vcmask 891904  }
   0x2   :  { %v2830_v3 = vpack.c.bf16 %v84_v1, %v77_v0  ;;  %v82_v4 = vld [vmem:[%s4582_s0 + $0xa8] sm:$0xff]  ;;  %v61_v6 = vld [vmem:[%s4582_s0] sm:$0xff]  ;;  %v68_v7 = vld [vmem:[%s4582_s0 + $0x38] sm:$0xff]  ;;  %s2787_s11 = smov 92   ;;  %s2788_s16 = smov 91   ;;  %vm1115_vm5 = vcmask 883712  }
   0x3   :  { %v2835_v5 = vpack.c.bf16 %v82_v4, %v75_v2  ;;  %v62_v8 = vld [vmem:[%s4582_s0 + $0x8] sm:$0xff]  ;;  %v69_v9 = vld [vmem:[%s4582_s0 + $0x40] sm:$0xff]  ;;  %v76_v10 = vld [vmem:[%s4582_s0 + $0x78] sm:$0xff]  ;;  %v2861_v13 = vpack.c.bf16 %v68_v7, %v61_v6  ;;  %s2789_s19 = smov 90   ;;  %vm1327_vm6 = vcmask 752640   ;;  %vm1539_vm7 = vcmask 744448  }
   0x4   :  { %150 = vrot.lane.b32.xlu1 %v2830_v3, %s2782_s26  ;;  %v83_v11 = vld [vmem:[%s4582_s0 + $0xb0] sm:$0xff]  ;;  %v2859_v12 = vpack.c.bf16 %v69_v9, %v62_v8  ;;  %v70_v16 = vld [vmem:[%s4582_s0 + $0x48] sm:$0xff]  ;;  %v85_v21 = vld [vmem:[%s4582_s0 + $0xc0] sm:$0xff]  ;;  %vm1751_vm8 = vcmask 736256  }
   0x5   :  { %146 = vrot.lane.b32.xlu0 %v2835_v5, %s2782_s26  ;;  %v2865_v14 = vpack.c.bf16 %v83_v11, %v76_v10  ;;  %v63_v15 = vld [vmem:[%s4582_s0 + $0x10] sm:$0xff]  ;;  %v86_v19 = vld [vmem:[%s4582_s0 + $0xc8] sm:$0xff]  ;;  %v64_v24 = vld [vmem:[%s4582_s0 + $0x18] sm:$0xff] }
   0x6   :  { %134 = vrot.lane.b32.xlu2 %v2859_v12, %s2782_s26  ;;  %v2875_v17 = vpack.c.bf16 %v70_v16, %v63_v15  ;;  %v79_v18 = vld [vmem:[%s4582_s0 + $0x90] sm:$0xff]  ;;  %v78_v20 = vld [vmem:[%s4582_s0 + $0x88] sm:$0xff]  ;;  %v80_v27 = vld [vmem:[%s4582_s0 + $0x98] sm:$0xff] }
   0x7   :  { %v2891_v22 = vpack.c.bf16 %v86_v19, %v79_v18  ;;  %v2895_v23 = vpack.c.bf16 %v85_v21, %v78_v20  ;;  %v71_v25 = vld [vmem:[%s4582_s0 + $0x50] sm:$0xff]  ;;  %v65_v29 = vld [vmem:[%s4582_s0 + $0x20] sm:$0xff]  ;;  %v72_v30 = vld [vmem:[%s4582_s0 + $0x58] sm:$0xff] }
   0x8   :  { %v2905_v26 = vpack.c.bf16 %v71_v25, %v64_v24  ;;  %v87_v28 = vld [vmem:[%s4582_s0 + $0xd0] sm:$0xff]  ;;  %v2925_v32 = vpack.c.bf16 %v72_v30, %v65_v29  ;;  %v81_v33 = vld [vmem:[%s4582_s0 + $0xa0] sm:$0xff]  ;;  %v88_v34 = vld [vmem:[%s4582_s0 + $0xd8] sm:$0xff] }
   0x9   :  { %v2921_v31 = vpack.c.bf16 %v87_v28, %v80_v27  ;;  %v2935_v35 = vpack.c.bf16 %v88_v34, %v81_v33  ;;  %v67_v36 = vld [vmem:[%s4582_s0 + $0x30] sm:$0xff]  ;;  %v74_v37 = vld [vmem:[%s4582_s0 + $0x68] sm:$0xff]  ;;  %v73_v39 = vld [vmem:[%s4582_s0 + $0x60] sm:$0xff] }
   0xa   :  { %v66_v38 = vld [vmem:[%s4582_s0 + $0x28] sm:$0xff]  ;;  %v2951_v40 = vpack.c.bf16 %v74_v37, %v67_v36  ;;  %v3007_v52 = vld [vmem:[%s4583_s1 + $0x18] sm:$0xff]  ;;  %v2714_v53 = vld [vmem:[%s4583_s1 + $0x10] sm:$0xff] }
   0xb   :  { %v2955_v41 = vpack.c.bf16 %v73_v39, %v66_v38  ;;  %v2712_v27 = vld [vmem:[%s4583_s1] sm:$0xff] }
   0xc   :  { %132 = vrot.lane.b32.xlu1 %v2861_v13, %s2782_s26 }
   0xd   :  { %148 = vrot.lane.b32.xlu0 %v2865_v14, %s2782_s26 }
   0xe   :  { %136 = vrot.lane.b32.xlu2 %v2875_v17, %s2782_s26 }
  0x14   :  { %154 = vrot.lane.b32.xlu1 %v2891_v22, %s2782_s26 }
  0x15   :  { %152 = vrot.lane.b32.xlu0 %v2895_v23, %s2782_s26 }
  0x16   :  { %138 = vrot.lane.b32.xlu2 %v2905_v26, %s2782_s26 }
  0x1c   :  { %156 = vrot.lane.b32.xlu1 %v2921_v31, %s2782_s26 }
  0x1d   :  { %140 = vrot.lane.b32.xlu0 %v2925_v32, %s2782_s26 }
  0x1e   :  { %158 = vrot.lane.b32.xlu2 %v2935_v35, %s2782_s26 }
  0x24   :  { %144 = vrot.lane.b32.xlu1 %v2951_v40, %s2782_s26 }
  0x25   :  { %142 = vrot.lane.b32.xlu0 %v2955_v41, %s2782_s26  ;;  %s2784_s26 = smov 110  }
  0x26   :  { %465 = vrot.lane.b32.xlu2 %v2835_v5, %s2783_s27 }
  0x2c   :  { %469 = vrot.lane.b32.xlu1 %v2830_v3, %s2783_s27 }
  0x2d   :  { %467 = vrot.lane.b32.xlu0 %v2865_v14, %s2783_s27 }
  0x2e   :  { %451 = vrot.lane.b32.xlu2 %v2861_v13, %s2783_s27 }
  0x34   :  { %455 = vrot.lane.b32.xlu1 %v2875_v17, %s2783_s27 }
  0x35   :  { %453 = vrot.lane.b32.xlu0 %v2859_v12, %s2783_s27 }
  0x36   :  { %471 = vrot.lane.b32.xlu2 %v2895_v23, %s2783_s27 }
  0x3c   :  { %457 = vrot.lane.b32.xlu1 %v2905_v26, %s2783_s27 }
  0x3d   :  { %473 = vrot.lane.b32.xlu0 %v2891_v22, %s2783_s27 }
  0x3e   :  { %459 = vrot.lane.b32.xlu2 %v2925_v32, %s2783_s27 }
  0x44   :  { %477 = vrot.lane.b32.xlu1 %v2935_v35, %s2783_s27 }
  0x45   :  { %475 = vrot.lane.b32.xlu0 %v2921_v31, %s2783_s27 }
  0x46   :  { %461 = vrot.lane.b32.xlu2 %v2955_v41, %s2783_s27 }
  0x4c   :  { %677 = vrot.lane.b32.xlu1 %v2835_v5, %s2784_s26 }
  0x4d   :  { %463 = vrot.lane.b32.xlu0 %v2951_v40, %s2783_s27 }
  0x4e   :  { %679 = vrot.lane.b32.xlu2 %v2865_v14, %s2784_s26 }
  0x54   :  { %663 = vrot.lane.b32.xlu1 %v2861_v13, %s2784_s26 }
  0x55   :  { %681 = vrot.lane.b32.xlu0 %v2830_v3, %s2784_s26 }
  0x56   :  { %665 = vrot.lane.b32.xlu2 %v2859_v12, %s2784_s26 }
  0x5c   :  { %683 = vrot.lane.b32.xlu1 %v2895_v23, %s2784_s26 }
  0x5d   :  { %667 = vrot.lane.b32.xlu0 %v2875_v17, %s2784_s26 }
  0x5e   :  { %685 = vrot.lane.b32.xlu2 %v2891_v22, %s2784_s26 }
  0x60   :  { %v135_v42 = vpop.permute.xlu2 %134 }
  0x64   :  { %671 = vrot.lane.b32.xlu1 %v2925_v32, %s2784_s26 }
  0x65   :  { %669 = vrot.lane.b32.xlu0 %v2905_v26, %s2784_s26 }
  0x66   :  { %687 = vrot.lane.b32.xlu2 %v2921_v31, %s2784_s26 }
  0x68   :  { %v137_v45 = vpop.permute.xlu2 %136 }
  0x69   :  { %v162_v54 = vsel %vm160_vm0, %v135_v42, %v137_v45 }
  0x6c   :  { %673 = vrot.lane.b32.xlu1 %v2955_v41, %s2784_s26 }
  0x6d   :  { %689 = vrot.lane.b32.xlu0 %v2935_v35, %s2784_s26 }
  0x6e   :  { %675 = vrot.lane.b32.xlu2 %v2951_v40, %s2784_s26 }
  0x70   :  { %v139_v50 = vpop.permute.xlu2 %138 }
  0x71   :  { %v163_v59 = vsel %vm160_vm0, %v137_v45, %v139_v50  ;;  %v2713_v45 = vld [vmem:[%s4583_s1 + $0x8] sm:$0xff] }
  0x74   :  { %891 = vrot.lane.b32.xlu1 %v2865_v14, %s2785_s28 }
  0x75   :  { %889 = vrot.lane.b32.xlu0 %v2835_v5, %s2785_s28 }
  0x76   :  { %v151_v43 = vpop.permute.xlu1 %150  ;;  %893 = vrot.lane.b32.xlu2 %v2830_v3, %s2785_s28 }
  0x77   :  { %v147_v44 = vpop.permute.xlu0 %146 }
  0x78   :  { %v159_v60 = vpop.permute.xlu2 %158 }
  0x7c   :  { %877 = vrot.lane.b32.xlu1 %v2859_v12, %s2785_s28 }
  0x7d   :  { %875 = vrot.lane.b32.xlu0 %v2861_v13, %s2785_s28 }
  0x7e   :  { %v133_v46 = vpop.permute.xlu1 %132  ;;  %879 = vrot.lane.b32.xlu2 %v2875_v17, %s2785_s28 }
  0x7f   :  { %v149_v47 = vpop.permute.xlu0 %148  ;;  %v161_v51 = vsel %vm160_vm0, %v133_v46, %v135_v42 }
  0x80   :  { %v167_v48 = vsel %vm160_vm0, %v147_v44, %v149_v47  ;;  %v168_v49 = vsel %vm160_vm0, %v149_v47, %v151_v43  ;;  %v466_v8 = vpop.permute.xlu2 %465 }
  0x81   :  { %198 = vmatpush.bf16.msra.mxu0 %v167_v48  ;;  %2730 = vmatpush.bf16.msra.mxu2 %v167_v48 }
  0x82   :  { %217 = vmatpush.bf16.msra.mxu1 %v168_v49  ;;  %2732 = vmatpush.bf16.msra.mxu3 %v168_v49 }
  0x84   :  { %897 = vrot.lane.b32.xlu1 %v2891_v22, %s2785_s28 }
  0x85   :  { %199 = vmatpush.bf16.msra.mxu0 %v161_v51  ;;  %2731 = vmatpush.bf16.msra.mxu2 %v161_v51 }
  0x86   :  { %218 = vmatpush.bf16.msra.mxu1 %v162_v54  ;;  %2733 = vmatpush.bf16.msra.mxu3 %v162_v54  ;;  %v155_v55 = vpop.permute.xlu1 %154 }
  0x87   :  { %v153_v56 = vpop.permute.xlu0 %152  ;;  %895 = vrot.lane.b32.xlu0 %v2895_v23, %s2785_s28  ;;  %881 = vrot.lane.b32.xlu2 %v2905_v26, %s2785_s28 }
  0x88   :  { %2513 = vmatmul.msk.bf16.vlgmr.msra.gmra.mxu2 %vm185_vm1, %v3007_v52  ;;  %v169_v57 = vsel %vm160_vm0, %v151_v43, %v153_v56  ;;  %v170_v58 = vsel %vm160_vm0, %v153_v56, %v155_v55  ;;  %2512 = vmatmul.msk.bf16.vlgmr.msra.gmra.mxu0 %vm185_vm1, %v2714_v53  ;;  %v452_v16 = vpop.permute.xlu2 %451 }
  0x89   :  { %2515 = vmatmul.msk.bf16.vlgmr.msra.gmra.mxu3 %vm185_vm1, %v3007_v52  ;;  %236 = vmatpush.bf16.msrb.mxu2 %v169_v57 }
  0x8a   :  { %255 = vmatpush.bf16.msrb.mxu3 %v170_v58  ;;  %2514 = vmatmul.msk.bf16.vlgmr.msra.gmra.mxu1 %vm185_vm1, %v2714_v53 }
  0x8c   :  { %899 = vrot.lane.b32.xlu1 %v2921_v31, %s2785_s28 }
  0x8d   :  { %237 = vmatpush.bf16.msrb.mxu2 %v163_v59 }
  0x8e   :  { %v157_v61 = vpop.permute.xlu1 %156 }
  0x8f   :  { %v141_v62 = vpop.permute.xlu0 %140  ;;  %v171_v63 = vsel %vm160_vm0, %v155_v55, %v157_v61  ;;  %v172_v0 = vsel %vm160_vm0, %v157_v61, %v159_v60  ;;  %883 = vrot.lane.b32.xlu0 %v2925_v32, %s2785_s28  ;;  %901 = vrot.lane.b32.xlu2 %v2935_v35, %s2785_s28  ;;  %v2716_v55 = vld [vmem:[%s4583_s1 + $0x20] sm:$0xff] }
  0x90   :  { %v164_v1 = vsel %vm160_vm0, %v139_v50, %v141_v62  ;;  %274 = vmatpush.bf16.msrb.mxu0 %v171_v63  ;;  %293 = vmatpush.bf16.msrb.mxu1 %v172_v0  ;;  %v472_v24 = vpop.permute.xlu2 %471  ;;  %v2717_v63 = vld [vmem:[%s4583_s1 + $0x28] sm:$0xff] }
  0x91   :  { %328 = vmatpush.bf16.msra.mxu2 %v2835_v5  ;;  %256 = vmatpush.bf16.msrb.mxu3 %v164_v1 }
  0x94   :  { %887 = vrot.lane.b32.xlu1 %v2951_v40, %s2785_s28 }
  0x95   :  { %347 = vmatpush.bf16.msra.mxu3 %v2865_v14  ;;  %329 = vmatpush.bf16.msra.mxu2 %v2861_v13 }
  0x96   :  { %v145_v2 = vpop.permute.xlu1 %144 }
  0x97   :  { %v143_v4 = vpop.permute.xlu0 %142  ;;  %885 = vrot.lane.b32.xlu0 %v2955_v41, %s2785_s28  ;;  %1101 = vrot.lane.b32.xlu2 %v2835_v5, %s2786_s8 }
  0x98   :  { %2516 = vmatmul.msk.bf16.vlgmr.msrb.gmra.mxu2 %vm185_vm1, %v2714_v53  ;;  %v165_v6 = vsel %vm160_vm0, %v141_v62, %v143_v4  ;;  %v166_v7 = vsel %vm160_vm0, %v143_v4, %v145_v2  ;;  %v460_v34 = vpop.permute.xlu2 %459 }
  0x99   :  { %348 = vmatpush.bf16.msra.mxu3 %v2859_v12  ;;  %275 = vmatpush.bf16.msrb.mxu0 %v165_v6 }
  0x9a   :  { %2518 = vmatmul.msk.bf16.vlgmr.msrb.gmra.mxu3 %vm185_vm1, %v2714_v53  ;;  %294 = vmatpush.bf16.msrb.mxu1 %v166_v7 }
  0x9b   :  { %404 = vmatpush.bf16.msrb.mxu2 %v2891_v22 }
  0x9c   :  { %2520 = vmatmul.msk.bf16.vlgmr.msrb.gmra.mxu0 %vm185_vm1, %v2714_v53  ;;  %1105 = vrot.lane.b32.xlu1 %v2830_v3, %s2786_s8 }
  0x9d   :  { %366 = vmatpush.bf16.msra.mxu0 %v2830_v3  ;;  %423 = vmatpush.bf16.msrb.mxu3 %v2921_v31 }
  0x9e   :  { %385 = vmatpush.bf16.msra.mxu1 %v2895_v23  ;;  %v470_v10 = vpop.permute.xlu1 %469 }
  0x9f   :  { %2522 = vmatmul.msk.bf16.vlgmr.msrb.gmra.mxu1 %vm185_vm1, %v2714_v53  ;;  %v468_v9 = vpop.permute.xlu0 %467  ;;  %405 = vmatpush.bf16.msrb.mxu2 %v2925_v32  ;;  %v488_v29 = vsel %vm479_vm2, %v470_v10, %v472_v24 }
  0xa0   :  { %v486_v11 = vsel %vm479_vm2, %v466_v8, %v468_v9  ;;  %v487_v15 = vsel %vm479_vm2, %v468_v9, %v470_v10  ;;  %1103 = vrot.lane.b32.xlu0 %v2865_v14, %s2786_s8  ;;  %1087 = vrot.lane.b32.xlu2 %v2861_v13, %s2786_s8  ;;  %v462_v43 = vpop.permute.xlu2 %461 }
  0xa1   :  { %367 = vmatpush.bf16.msra.mxu0 %v2875_v17  ;;  %424 = vmatpush.bf16.msrb.mxu3 %v2955_v41  ;;  %v484_v44 = vsel %vm479_vm2, %v460_v34, %v462_v43 }
  0xa2   :  { %386 = vmatpush.bf16.msra.mxu1 %v2905_v26 }
  0xa4   :  { %1091 = vrot.lane.b32.xlu1 %v2875_v17, %s2786_s8 }
  0xa5   :  { %516 = vmatpush.bf16.msrb.mxu0 %v486_v11 }
  0xa6   :  { %535 = vmatpush.bf16.msrb.mxu1 %v487_v15  ;;  %v456_v19 = vpop.permute.xlu1 %455 }
  0xa7   :  { %v454_v18 = vpop.permute.xlu0 %453 }
  0xa8   :  { %2517 = vmatmul.msk.bf16.gmra.mxu2 %vm185_vm1, %v3007_v52  ;;  %1089 = vrot.lane.b32.xlu0 %v2859_v12, %s2786_s8  ;;  %v480_v20 = vsel %vm479_vm2, %v452_v16, %v454_v18  ;;  %v481_v21 = vsel %vm479_vm2, %v454_v18, %v456_v19  ;;  %v680_v48 = vpop.permute.xlu2 %679 }
  0xa9   :  { %517 = vmatpush.bf16.msrb.mxu0 %v480_v20  ;;  %1107 = vrot.lane.b32.xlu2 %v2895_v23, %s2786_s8 }
  0xaa   :  { %2519 = vmatmul.msk.bf16.gmra.mxu3 %vm185_vm1, %v3007_v52  ;;  %536 = vmatpush.bf16.msrb.mxu1 %v481_v21 }
  0xac   :  { %2521 = vmatmul.msk.bf16.gmra.mxu0 %vm185_vm1, %v3007_v52  ;;  %1093 = vrot.lane.b32.xlu1 %v2905_v26, %s2786_s8 }
  0xae   :  { %v458_v28 = vpop.permute.xlu1 %457 }
  0xaf   :  { %2523 = vmatmul.msk.bf16.gmra.mxu1 %vm185_vm1, %v3007_v52  ;;  %v474_v25 = vpop.permute.xlu0 %473  ;;  %v482_v36 = vsel %vm479_vm2, %v456_v19, %v458_v28  ;;  %v483_v38 = vsel %vm479_vm2, %v458_v28, %v460_v34 }
  0xb0   :  { %1109 = vrot.lane.b32.xlu0 %v2891_v22, %s2786_s8  ;;  %v489_v30 = vsel %vm479_vm2, %v472_v24, %v474_v25  ;;  %v666_v52 = vpop.permute.xlu2 %665 }
  0xb1   :  { %1095 = vrot.lane.b32.xlu2 %v2925_v32, %s2786_s8 }
  0xb4   :  { %1113 = vrot.lane.b32.xlu1 %v2935_v35, %s2786_s8 }
  0xb6   :  { %v478_v39 = vpop.permute.xlu1 %477 }
  0xb7   :  { %v476_v33 = vpop.permute.xlu0 %475 }
  0xb8   :  { %2532 = vmatmul.msk.bf16.vlgmr.msra.gmra.mxu2 %vm185_vm1, %v2712_v27  ;;  %1111 = vrot.lane.b32.xlu0 %v2921_v31, %s2786_s8  ;;  %v490_v37 = vsel %vm479_vm2, %v474_v25, %v476_v33  ;;  %v491_v42 = vsel %vm479_vm2, %v476_v33, %v478_v39  ;;  %v686_v57 = vpop.permute.xlu2 %685 }
  0xb9   :  { %554 = vmatpush.bf16.msra.mxu2 %v488_v29  ;;  %1097 = vrot.lane.b32.xlu2 %v2955_v41, %s2786_s8 }
  0xba   :  { %2534 = vmatmul.msk.bf16.vlgmr.msra.gmra.mxu3 %vm185_vm1, %v2712_v27 }
  0xbb   :  { %573 = vmatpush.bf16.msra.mxu3 %v489_v30 }
  0xbc   :  { %2536 = vmatmul.msk.bf16.vlgmr.msra.gmra.mxu0 %vm185_vm1, %v2712_v27  ;;  %1313 = vrot.lane.b32.xlu1 %v2835_v5, %s2787_s11 }
  0xbd   :  { %555 = vmatpush.bf16.msra.mxu2 %v482_v36  ;;  %592 = vmatpush.bf16.msra.mxu0 %v490_v37 }
  0xbe   :  { %v678_v46 = vpop.permute.xlu1 %677 }
  0xbf   :  { %2538 = vmatmul.msk.bf16.vlgmr.msra.gmra.mxu1 %vm185_vm1, %v2712_v27  ;;  %574 = vmatpush.bf16.msra.mxu3 %v483_v38  ;;  %v464_v47 = vpop.permute.xlu0 %463  ;;  %v698_v53 = vsel %vm691_vm3, %v678_v46, %v680_v48 }
  0xc0   :  { %611 = vmatpush.bf16.msra.mxu1 %v491_v42  ;;  %1099 = vrot.lane.b32.xlu0 %v2951_v40, %s2786_s8  ;;  %v485_v49 = vsel %vm479_vm2, %v462_v43, %v464_v47  ;;  %v688_v4 = vpop.permute.xlu2 %687 }
  0xc1   :  { %593 = vmatpush.bf16.msra.mxu0 %v484_v44  ;;  %1315 = vrot.lane.b32.xlu2 %v2865_v14, %s2787_s11  ;;  %v702_v8 = vsel %vm691_vm3, %v686_v57, %v688_v4 }
  0xc4   :  { %1299 = vrot.lane.b32.xlu1 %v2861_v13, %s2787_s11  ;;  %612 = vmatpush.bf16.msra.mxu1 %v485_v49 }
  0xc6   :  { %v664_v50 = vpop.permute.xlu1 %663 }
  0xc7   :  { %v682_v51 = vpop.permute.xlu0 %681  ;;  %v692_v58 = vsel %vm691_vm3, %v664_v50, %v666_v52 }
  0xc8   :  { %2533 = vmatmul.msk.bf16.gmra.mxu2 %vm185_vm1, %v2713_v45  ;;  %1317 = vrot.lane.b32.xlu0 %v2830_v3, %s2787_s11  ;;  %v699_v54 = vsel %vm691_vm3, %v680_v48, %v682_v51  ;;  %v676_v11 = vpop.permute.xlu2 %675 }
  0xc9   :  { %1301 = vrot.lane.b32.xlu2 %v2859_v12, %s2787_s11 }
  0xca   :  { %2535 = vmatmul.msk.bf16.gmra.mxu3 %vm185_vm1, %v2713_v45 }
  0xcc   :  { %2537 = vmatmul.msk.bf16.gmra.mxu0 %vm185_vm1, %v2713_v45  ;;  %1319 = vrot.lane.b32.xlu1 %v2895_v23, %s2787_s11 }
  0xce   :  { %v684_v56 = vpop.permute.xlu1 %683 }
  0xcf   :  { %2539 = vmatmul.msk.bf16.gmra.mxu1 %vm185_vm1, %v2713_v45  ;;  %v700_v59 = vsel %vm691_vm3, %v682_v51, %v684_v56  ;;  %v668_v60 = vpop.permute.xlu0 %667  ;;  %v701_v61 = vsel %vm691_vm3, %v684_v56, %v686_v57 }
  0xd0   :  { %1303 = vrot.lane.b32.xlu0 %v2875_v17, %s2787_s11  ;;  %v693_v62 = vsel %vm691_vm3, %v666_v52, %v668_v60  ;;  %v894_v19 = vpop.permute.xlu2 %893 }
  0xd1   :  { %1321 = vrot.lane.b32.xlu2 %v2891_v22, %s2787_s11 }
  0xd4   :  { %1307 = vrot.lane.b32.xlu1 %v2925_v32, %s2787_s11 }
  0xd6   :  { %v672_v2 = vpop.permute.xlu1 %671 }
  0xd7   :  { %v670_v0 = vpop.permute.xlu0 %669 }
  0xd8   :  { %2540 = vmatmul.msk.bf16.vlgmr.msrb.gmra.mxu2 %vm185_vm1, %v2712_v27  ;;  %1305 = vrot.lane.b32.xlu0 %v2905_v26, %s2787_s11  ;;  %v694_v1 = vsel %vm691_vm3, %v668_v60, %v670_v0  ;;  %v695_v6 = vsel %vm691_vm3, %v670_v0, %v672_v2  ;;  %v880_v33 = vpop.permute.xlu2 %879  ;;  %v3279_v60 = vld [vmem:[%s4583_s1 + $0x38] sm:$0xff] }
  0xd9   :  { %728 = vmatpush.bf16.msrb.mxu2 %v698_v53  ;;  %1323 = vrot.lane.b32.xlu2 %v2921_v31, %s2787_s11 }
  0xda   :  { %2542 = vmatmul.msk.bf16.vlgmr.msrb.gmra.mxu3 %vm185_vm1, %v2712_v27 }
  0xdb   :  { %747 = vmatpush.bf16.msrb.mxu3 %v699_v54 }
  0xdc   :  { %2556 = vmatmul.msk.bf16.vlgmr.msrb.gmra.mxu0 %vm185_vm1, %v2716_v55  ;;  %1309 = vrot.lane.b32.xlu1 %v2955_v41, %s2787_s11 }
  0xdd   :  { %729 = vmatpush.bf16.msrb.mxu2 %v692_v58  ;;  %766 = vmatpush.bf16.msrb.mxu0 %v700_v59 }
  0xde   :  { %v674_v10 = vpop.permute.xlu1 %673 }
  0xdf   :  { %2558 = vmatmul.msk.bf16.vlgmr.msrb.gmra.mxu1 %vm185_vm1, %v2716_v55  ;;  %748 = vmatpush.bf16.msrb.mxu3 %v693_v62  ;;  %v690_v7 = vpop.permute.xlu0 %689  ;;  %v696_v15 = vsel %vm691_vm3, %v672_v2, %v674_v10  ;;  %v697_v16 = vsel %vm691_vm3, %v674_v10, %v676_v11 }
  0xe0   :  { %785 = vmatpush.bf16.msrb.mxu1 %v701_v61  ;;  %1325 = vrot.lane.b32.xlu0 %v2935_v35, %s2787_s11  ;;  %v703_v9 = vsel %vm691_vm3, %v688_v4, %v690_v7 }
  0xe1   :  { %1311 = vrot.lane.b32.xlu2 %v2951_v40, %s2787_s11  ;;  %767 = vmatpush.bf16.msrb.mxu0 %v694_v1 }
  0xe4   :  { %1527 = vrot.lane.b32.xlu1 %v2865_v14, %s2788_s16  ;;  %786 = vmatpush.bf16.msrb.mxu1 %v695_v6 }
  0xe6   :  { %v892_v20 = vpop.permute.xlu1 %891 }
  0xe7   :  { %v890_v18 = vpop.permute.xlu0 %889  ;;  %v911_v24 = vsel %vm903_vm4, %v892_v20, %v894_v19 }
  0xe8   :  { %2541 = vmatmul.msk.bf16.gmra.mxu2 %vm185_vm1, %v2713_v45  ;;  %1525 = vrot.lane.b32.xlu0 %v2835_v5, %s2788_s16  ;;  %v910_v21 = vsel %vm903_vm4, %v890_v18, %v892_v20 }
  0xe9   :  { %1529 = vrot.lane.b32.xlu2 %v2830_v3, %s2788_s16 }
  0xea   :  { %2543 = vmatmul.msk.bf16.gmra.mxu3 %vm185_vm1, %v2713_v45  ;;  %v882_v45 = vpop.permute.xlu2 %881 }
  0xeb   :  { %v906_v49 = vsel %vm903_vm4, %v880_v33, %v882_v45 }
  0xec   :  { %2557 = vmatmul.msk.bf16.gmra.mxu0 %vm185_vm1, %v2717_v63  ;;  %1513 = vrot.lane.b32.xlu1 %v2859_v12, %s2788_s16 }
  0xee   :  { %v878_v29 = vpop.permute.xlu1 %877 }
  0xef   :  { %2559 = vmatmul.msk.bf16.gmra.mxu1 %vm185_vm1, %v2717_v63  ;;  %v876_v28 = vpop.permute.xlu0 %875 }
  0xf0   :  { %1511 = vrot.lane.b32.xlu0 %v2861_v13, %s2788_s16  ;;  %v904_v39 = vsel %vm903_vm4, %v876_v28, %v878_v29 }
  0xf1   :  { %1515 = vrot.lane.b32.xlu2 %v2875_v17, %s2788_s16 }
  0xf2   :  { %v902_v54 = vpop.permute.xlu2 %901 }
  0xf4   :  { %1533 = vrot.lane.b32.xlu1 %v2891_v22, %s2788_s16 }
  0xf6   :  { %v898_v38 = vpop.permute.xlu1 %897 }
  0xf8   :  { %2560 = vmatmul.msk.bf16.vlgmr.msra.gmra.mxu2 %vm185_vm1, %v2716_v55  ;;  %1531 = vrot.lane.b32.xlu0 %v2895_v23, %s2788_s16 }
  0xf9   :  { %804 = vmatpush.bf16.msra.mxu2 %v702_v8  ;;  %1517 = vrot.lane.b32.xlu2 %v2905_v26, %s2788_s16  ;;  %v896_v43 = vpop.permute.xlu0 %895 }
  0xfa   :  { %2562 = vmatmul.msk.bf16.vlgmr.msra.gmra.mxu3 %vm185_vm1, %v2716_v55  ;;  %v912_v46 = vsel %vm903_vm4, %v894_v19, %v896_v43  ;;  %v913_v47 = vsel %vm903_vm4, %v896_v43, %v898_v38 }
  0xfb   :  { %823 = vmatpush.bf16.msra.mxu3 %v703_v9 }
  0xfc   :  { %2564 = vmatmul.msk.bf16.vlgmr.msra.gmra.mxu0 %vm185_vm1, %v2716_v55  ;;  %1535 = vrot.lane.b32.xlu1 %v2921_v31, %s2788_s16 }
  0xfd   :  { %805 = vmatpush.bf16.msra.mxu2 %v696_v15  ;;  %940 = vmatpush.bf16.msra.mxu0 %v910_v21 }
  0xfe   :  { %v900_v50 = vpop.permute.xlu1 %899 }
  0xff   :  { %2566 = vmatmul.msk.bf16.vlgmr.msra.gmra.mxu1 %vm185_vm1, %v2716_v55  ;;  %824 = vmatpush.bf16.msra.mxu3 %v697_v16  ;;  %v914_v51 = vsel %vm903_vm4, %v898_v38, %v900_v50  ;;  %v915_v55 = vsel %vm903_vm4, %v900_v50, %v902_v54  ;;  %v3347_v50 = vld [vmem:[%s4583_s1 + $0x48] sm:$0xff] }
 0x100   :  { %1519 = vrot.lane.b32.xlu0 %v2925_v32, %s2788_s16  ;;  %959 = vmatpush.bf16.msra.mxu1 %v911_v24 }
 0x101   :  { %1537 = vrot.lane.b32.xlu2 %v2935_v35, %s2788_s16  ;;  %941 = vmatpush.bf16.msra.mxu0 %v904_v39  ;;  %v884_v52 = vpop.permute.xlu0 %883 }
 0x102   :  { %v907_v53 = vsel %vm903_vm4, %v882_v45, %v884_v52 }
 0x104   :  { %1523 = vrot.lane.b32.xlu1 %v2951_v40, %s2788_s16 }
 0x105   :  { %v3203_v25 = vpop.f32.mrf.mxu0 }
 0x106   :  { %v888_v0 = vpop.permute.xlu1 %887 }
 0x107   :  { %v3205_v27 = vpop.f32.mrf.mxu1 }
 0x108   :  { %2561 = vmatmul.msk.bf16.gmra.mxu2 %vm185_vm1, %v2717_v63  ;;  %1521 = vrot.lane.b32.xlu0 %v2955_v41, %s2788_s16 }
 0x109   :  { %1737 = vrot.lane.b32.xlu2 %v2835_v5, %s2789_s19  ;;  %v886_v58 = vpop.permute.xlu0 %885 }
 0x10a   :  { %2563 = vmatmul.msk.bf16.gmra.mxu3 %vm185_vm1, %v2717_v63 }
 0x10b   :  { %v3215_v30 = vpop.f32.mrf.mxu2 }
 0x10c   :  { %v3217_v34 = vpop.f32.mrf.mxu3  ;;  %2565 = vmatmul.msk.bf16.gmra.mxu0 %vm185_vm1, %v2717_v63  ;;  %1741 = vrot.lane.b32.xlu1 %v2830_v3, %s2789_s19  ;;  %v3239_v3 = vld [vmem:[%s4583_s1 + $0x30] sm:$0xff] }
 0x10d   :  { %v3227_v37 = vpop.f32.mrf.mxu0 }
 0x10e   :  { %v1106_v8 = vpop.permute.xlu1 %1105 }
 0x10f   :  { %2567 = vmatmul.msk.bf16.gmra.mxu1 %vm185_vm1, %v2717_v63  ;;  %v3223_v36 = vpop.f32.mrf.mxu1 }
 0x110   :  { %1739 = vrot.lane.b32.xlu0 %v2865_v14, %s2789_s19  ;;  %v905_v14 = vsel %vm903_vm4, %v878_v29, %v880_v33 }
 0x111   :  { %960 = vmatpush.bf16.msra.mxu1 %v905_v14  ;;  %1723 = vrot.lane.b32.xlu2 %v2861_v13, %s2789_s19 }
 0x112   :  { %v1104_v63 = vpop.permute.xlu0 %1103 }
 0x113   :  { %v3232_v42 = vpop.f32.mrf.mxu2  ;;  %v1123_v10 = vsel %vm1115_vm5, %v1104_v63, %v1106_v8 }
 0x114   :  { %v3234_v44 = vpop.f32.mrf.mxu3  ;;  %1727 = vrot.lane.b32.xlu1 %v2875_v17, %s2789_s19 }
 0x116   :  { %v1092_v33 = vpop.permute.xlu1 %1091 }
 0x118   :  { %2580 = vmatmul.msk.bf16.vlgmr.msrb.gmra.mxu2 %vm185_vm1, %v3239_v3  ;;  %1725 = vrot.lane.b32.xlu0 %v2859_v12, %s2789_s19 }
 0x119   :  { %v3252_v5 = vpop.f32.mrf.mxu0  ;;  %978 = vmatpush.bf16.msrb.mxu2 %v912_v46  ;;  %1743 = vrot.lane.b32.xlu2 %v2895_v23, %s2789_s19  ;;  %v1102_v23 = vpop.permute.xlu2 %1101 }
 0x11a   :  { %2582 = vmatmul.msk.bf16.vlgmr.msrb.gmra.mxu3 %vm185_vm1, %v3239_v3  ;;  %v1090_v6 = vpop.permute.xlu0 %1089  ;;  %v1122_v9 = vsel %vm1115_vm5, %v1102_v23, %v1104_v63 }
 0x11b   :  { %997 = vmatpush.bf16.msrb.mxu3 %v913_v47  ;;  %v239_v17 = vpop.f32.mrf.mxu2  ;;  %v1117_v43 = vsel %vm1115_vm5, %v1090_v6, %v1092_v33 }
 0x11c   :  { %v3254_v48 = vpop.f32.mrf.mxu1  ;;  %2584 = vmatmul.msk.bf16.vlgmr.msrb.gmra.mxu0 %vm185_vm1, %v3239_v3  ;;  %1729 = vrot.lane.b32.xlu1 %v2905_v26, %s2789_s19  ;;  %v908_v26 = vsel %vm903_vm4, %v884_v52, %v886_v58 }
 0x11d   :  { %v258_v12 = vpop.f32.mrf.mxu3  ;;  %979 = vmatpush.bf16.msrb.mxu2 %v906_v49  ;;  %1016 = vmatpush.bf16.msrb.mxu0 %v914_v51 }
 0x11f   :  { %2586 = vmatmul.msk.bf16.vlgmr.msrb.gmra.mxu1 %vm185_vm1, %v3239_v3  ;;  %998 = vmatpush.bf16.msrb.mxu3 %v907_v53 }
 0x120   :  { %1035 = vmatpush.bf16.msrb.mxu1 %v915_v55  ;;  %1745 = vrot.lane.b32.xlu0 %v2891_v22, %s2789_s19 }
 0x121   :  { %v3270_v13 = vpop.f32.mrf.mxu0  ;;  %1017 = vmatpush.bf16.msrb.mxu0 %v908_v26  ;;  %1731 = vrot.lane.b32.xlu2 %v2925_v32, %s2789_s19  ;;  %v1088_v2 = vpop.permute.xlu2 %1087 }
 0x122   :  { %v1110_v21 = vpop.permute.xlu0 %1109  ;;  %v1116_v39 = vsel %vm1115_vm5, %v1088_v2, %v1090_v6 }
 0x123   :  { %v241_v57 = vpop.f32.mrf.mxu2 }
 0x124   :  { %v3272_v56 = vpop.f32.mrf.mxu1  ;;  %1749 = vrot.lane.b32.xlu1 %v2935_v35, %s2789_s19 }
 0x125   :  { %v260_v59 = vpop.f32.mrf.mxu3 }
 0x128   :  { %2581 = vmatmul.msk.bf16.gmra.mxu2 %vm185_vm1, %v3279_v60  ;;  %1747 = vrot.lane.b32.xlu0 %v2921_v31, %s2789_s19  ;;  %v909_v31 = vsel %vm903_vm4, %v886_v58, %v888_v0 }
 0x129   :  { %v3290_v22 = vpop.f32.mrf.mxu0  ;;  %1036 = vmatpush.bf16.msrb.mxu1 %v909_v31  ;;  %1733 = vrot.lane.b32.xlu2 %v2955_v41, %s2789_s19  ;;  %v1108_v11 = vpop.permute.xlu2 %1107 }
 0x12a   :  { %2583 = vmatmul.msk.bf16.gmra.mxu3 %vm185_vm1, %v3279_v60  ;;  %v1124_v18 = vsel %vm1115_vm5, %v1106_v8, %v1108_v11  ;;  %v1125_v29 = vsel %vm1115_vm5, %v1108_v11, %v1110_v21 }
 0x12b   :  { %v244_v62 = vpop.f32.mrf.mxu2 }
 0x12c   :  { %v3292_v61 = vpop.f32.mrf.mxu1  ;;  %2585 = vmatmul.msk.bf16.gmra.mxu0 %vm185_vm1, %v3279_v60 }
 0x12d   :  { %v263_v35 = vpop.f32.mrf.mxu3 }
 0x12f   :  { %2587 = vmatmul.msk.bf16.gmra.mxu1 %vm185_vm1, %v3279_v60 }
 0x130   :  { %1735 = vrot.lane.b32.xlu0 %v2951_v40, %s2789_s19  ;;  %v3316_v40 = vld [vmem:[%s4583_s1 + $0x40] sm:$0xff] }
 0x131   :  { %v3303_v1 = vpop.f32.mrf.mxu0  ;;  %v1096_v53 = vpop.permute.xlu2 %1095 }
 0x133   :  { %v246_v4 = vpop.f32.mrf.mxu2 }
 0x134   :  { %v3305_v32 = vpop.f32.mrf.mxu1 }
 0x135   :  { %v265_v7 = vpop.f32.mrf.mxu3 }
 0x138   :  { %2588 = vmatmul.msk.bf16.vlgmr.msra.gmra.mxu2 %vm185_vm1, %v3239_v3 }
 0x139   :  { %v369_v41 = vpop.f32.mrf.mxu0  ;;  %1152 = vmatpush.bf16.msra.mxu2 %v1122_v9  ;;  %v1098_v31 = vpop.permute.xlu2 %1097 }
 0x13a   :  { %2590 = vmatmul.msk.bf16.vlgmr.msra.gmra.mxu3 %vm185_vm1, %v3239_v3  ;;  %v3320_v15 = vadd.f32 %v369_v41, %v239_v17  ;;  %v1120_v9 = vsel %vm1115_vm5, %v1096_v53, %v1098_v31 }
 0x13b   :  { %1171 = vmatpush.bf16.msra.mxu3 %v1123_v10  ;;  %v331_v20 = vpop.f32.mrf.mxu2 }
 0x13c   :  { %v388_v16 = vpop.f32.mrf.mxu1  ;;  %v332_v24 = vadd.f32 %v331_v20, %v3203_v25  ;;  %2604 = vmatmul.msk.bf16.vlgmr.msra.gmra.mxu0 %vm185_vm1, %v3316_v40 }
 0x13d   :  { %v3323_v19 = vadd.f32 %v388_v16, %v258_v12  ;;  %v350_v28 = vpop.f32.mrf.mxu3  ;;  %1190 = vmatpush.bf16.msra.mxu0 %v1124_v18  ;;  %1153 = vmatpush.bf16.msra.mxu2 %v1116_v39 }
 0x13e   :  { %v351_v38 = vadd.f32 %v350_v28, %v3205_v27 }
 0x13f   :  { %2606 = vmatmul.msk.bf16.vlgmr.msra.gmra.mxu1 %vm185_vm1, %v3316_v40  ;;  %1172 = vmatpush.bf16.msra.mxu3 %v1117_v43 }
 0x140   :  { %1209 = vmatpush.bf16.msra.mxu1 %v1125_v29 }
 0x141   :  { %v371_v25 = vpop.f32.mrf.mxu0 }
 0x142   :  { %v3334_v3 = vadd.f32 %v371_v25, %v241_v57 }
 0x143   :  { %v333_v46 = vpop.f32.mrf.mxu2 }
 0x144   :  { %v390_v14 = vpop.f32.mrf.mxu1  ;;  %v334_v27 = vadd.f32 %v333_v46, %v3227_v37  ;;  %v1094_v37 = vpop.permute.xlu1 %1093 }
 0x145   :  { %v3336_v45 = vadd.f32 %v390_v14, %v260_v59  ;;  %v352_v47 = vpop.f32.mrf.mxu3  ;;  %v1118_v58 = vsel %vm1115_vm5, %v1092_v33, %v1094_v37  ;;  %v1119_v2 = vsel %vm1115_vm5, %v1094_v37, %v1096_v53 }
 0x146   :  { %v3340_v49 = vadd.f32 %v352_v47, %v3223_v36  ;;  %1191 = vmatpush.bf16.msra.mxu0 %v1118_v58  ;;  %1210 = vmatpush.bf16.msra.mxu1 %v1119_v2 }
 0x148   :  { %2589 = vmatmul.msk.bf16.gmra.mxu2 %vm185_vm1, %v3279_v60 }
 0x149   :  { %v374_v17 = vpop.f32.mrf.mxu0 }
 0x14a   :  { %2591 = vmatmul.msk.bf16.gmra.mxu3 %vm185_vm1, %v3279_v60  ;;  %v3351_v51 = vadd.f32 %v374_v17, %v244_v62  ;;  %v1112_v60 = vpop.permute.xlu0 %1111 }
 0x14b   :  { %v336_v36 = vpop.f32.mrf.mxu2  ;;  %v1126_v6 = vsel %vm1115_vm5, %v1110_v21, %v1112_v60 }
 0x14c   :  { %v393_v52 = vpop.f32.mrf.mxu1  ;;  %v337_v54 = vadd.f32 %v336_v36, %v3215_v30  ;;  %2605 = vmatmul.msk.bf16.gmra.mxu0 %vm185_vm1, %v3347_v50  ;;  %v1114_v63 = vpop.permute.xlu1 %1113 }
 0x14d   :  { %v3353_v12 = vadd.f32 %v393_v52, %v263_v35  ;;  %v355_v55 = vpop.f32.mrf.mxu3  ;;  %v1127_v8 = vsel %vm1115_vm5, %v1112_v60, %v1114_v63 }
 0x14e   :  { %v356_v57 = vadd.f32 %v355_v55, %v3217_v34 }
 0x14f   :  { %2607 = vmatmul.msk.bf16.gmra.mxu1 %vm185_vm1, %v3347_v50 }
 0x151   :  { %v376_v59 = vpop.f32.mrf.mxu0 }
 0x152   :  { %v3362_v26 = vadd.f32 %v376_v59, %v246_v4 }
 0x153   :  { %v338_v30 = vpop.f32.mrf.mxu2 }
 0x154   :  { %v395_v23 = vpop.f32.mrf.mxu1  ;;  %v339_v35 = vadd.f32 %v338_v30, %v3232_v42  ;;  %v1100_v42 = vpop.permute.xlu0 %1099 }
 0x155   :  { %v3364_v62 = vadd.f32 %v395_v23, %v265_v7  ;;  %v357_v0 = vpop.f32.mrf.mxu3  ;;  %v1314_v20 = vpop.permute.xlu1 %1313  ;;  %v1121_v21 = vsel %vm1115_vm5, %v1098_v31, %v1100_v42 }
 0x156   :  { %v358_v34 = vadd.f32 %v357_v0, %v3234_v44 }
 0x158   :  { %2608 = vmatmul.msk.bf16.vlgmr.msrb.gmra.mxu2 %vm185_vm1, %v3316_v40 }
 0x159   :  { %v519_v4 = vpop.f32.mrf.mxu0  ;;  %1228 = vmatpush.bf16.msrb.mxu2 %v1126_v6 }
 0x15a   :  { %2610 = vmatmul.msk.bf16.vlgmr.msrb.gmra.mxu3 %vm185_vm1, %v3316_v40  ;;  %v3375_v7 = vadd.f32 %v519_v4, %v332_v24  ;;  %v1316_v24 = vpop.permute.xlu2 %1315 }
 0x15b   :  { %1247 = vmatpush.bf16.msrb.mxu3 %v1127_v8  ;;  %v407_v41 = vpop.f32.mrf.mxu2  ;;  %v1334_v28 = vsel %vm1327_vm6, %v1314_v20, %v1316_v24 }
 0x15c   :  { %v538_v44 = vpop.f32.mrf.mxu1  ;;  %v408_v11 = vadd.f32 %v407_v41, %v3252_v5  ;;  %2612 = vmatmul.msk.bf16.vlgmr.msrb.gmra.mxu0 %vm185_vm1, %v3316_v40  ;;  %v1318_v29 = vpop.permute.xlu0 %1317 }
 0x15d   :  { %v3378_v10 = vadd.f32 %v538_v44, %v351_v38  ;;  %v426_v16 = vpop.f32.mrf.mxu3  ;;  %1229 = vmatpush.bf16.msrb.mxu2 %v1120_v9  ;;  %1364 = vmatpush.bf16.msrb.mxu0 %v1334_v28  ;;  %v1300_v46 = vpop.permute.xlu1 %1299 }
 0x15e   :  { %v3384_v18 = vadd.f32 %v426_v16, %v3254_v48  ;;  %v1335_v48 = vsel %vm1327_vm6, %v1316_v24, %v1318_v29 }
 0x15f   :  { %2614 = vmatmul.msk.bf16.vlgmr.msrb.gmra.mxu1 %vm185_vm1, %v3316_v40  ;;  %1248 = vmatpush.bf16.msrb.mxu3 %v1121_v21 }
 0x160   :  { %1383 = vmatpush.bf16.msrb.mxu1 %v1335_v48 }
 0x161   :  { %v521_v5 = vpop.f32.mrf.mxu0 }
 0x162   :  { %v3390_v33 = vadd.f32 %v521_v5, %v334_v27  ;;  %v1302_v47 = vpop.permute.xlu2 %1301 }
 0x163   :  { %v409_v40 = vpop.f32.mrf.mxu2  ;;  %v1328_v23 = vsel %vm1327_vm6, %v1300_v46, %v1302_v47 }
 0x164   :  { %v540_v38 = vpop.f32.mrf.mxu1  ;;  %v410_v43 = vadd.f32 %v409_v40, %v3270_v13  ;;  %v1304_v36 = vpop.permute.xlu0 %1303  ;;  %1365 = vmatpush.bf16.msrb.mxu0 %v1328_v23  ;;  %v3466_v40 = vld [vmem:[%s4583_s1 + $0x58] sm:$0xff] }
 0x165   :  { %v3394_v39 = vadd.f32 %v540_v38, %v3340_v49  ;;  %v428_v25 = vpop.f32.mrf.mxu3  ;;  %v1329_v0 = vsel %vm1327_vm6, %v1302_v47, %v1304_v36 }
 0x166   :  { %v429_v14 = vadd.f32 %v428_v25, %v3272_v56  ;;  %1384 = vmatpush.bf16.msrb.mxu1 %v1329_v0 }
 0x168   :  { %2609 = vmatmul.msk.bf16.gmra.mxu2 %vm185_vm1, %v3347_v50 }
 0x169   :  { %v524_v27 = vpop.f32.mrf.mxu0 }
 0x16a   :  { %2611 = vmatmul.msk.bf16.gmra.mxu3 %vm185_vm1, %v3347_v50  ;;  %v3402_v17 = vadd.f32 %v524_v27, %v337_v54  ;;  %v1322_v55 = vpop.permute.xlu2 %1321 }
 0x16b   :  { %v412_v37 = vpop.f32.mrf.mxu2 }
 0x16c   :  { %v543_v49 = vpop.f32.mrf.mxu1  ;;  %v3407_v13 = vadd.f32 %v412_v37, %v3290_v22  ;;  %2613 = vmatmul.msk.bf16.gmra.mxu0 %vm185_vm1, %v3347_v50  ;;  %v1320_v22 = vpop.permute.xlu1 %1319 }
 0x16d   :  { %v3404_v52 = vadd.f32 %v543_v49, %v356_v57  ;;  %v431_v56 = vpop.f32.mrf.mxu3  ;;  %v1337_v31 = vsel %vm1327_vm6, %v1320_v22, %v1322_v55 }
 0x16e   :  { %v3412_v53 = vadd.f32 %v431_v56, %v3292_v61  ;;  %v3427_v61 = vld [vmem:[%s4583_s1 + $0x50] sm:$0xff] }
 0x16f   :  { %2615 = vmatmul.msk.bf16.gmra.mxu1 %vm185_vm1, %v3347_v50 }
 0x171   :  { %v526_v54 = vpop.f32.mrf.mxu0 }
 0x172   :  { %v3416_v58 = vadd.f32 %v526_v54, %v339_v35  ;;  %v1306_v35 = vpop.permute.xlu0 %1305  ;;  %v1324_v2 = vpop.permute.xlu2 %1323 }
 0x173   :  { %v414_v60 = vpop.f32.mrf.mxu2  ;;  %v1330_v8 = vsel %vm1327_vm6, %v1304_v36, %v1306_v35  ;;  %v1338_v44 = vsel %vm1327_vm6, %v1322_v55, %v1324_v2 }
 0x174   :  { %v545_v57 = vpop.f32.mrf.mxu1  ;;  %v3422_v30 = vadd.f32 %v414_v60, %v3303_v1  ;;  %v1308_v9 = vpop.permute.xlu1 %1307 }
 0x175   :  { %v3418_v59 = vadd.f32 %v545_v57, %v358_v34  ;;  %v433_v63 = vpop.f32.mrf.mxu3  ;;  %v1336_v34 = vsel %vm1327_vm6, %v1318_v29, %v1320_v22 }
 0x176   :  { %v3430_v50 = vadd.f32 %v433_v63, %v3305_v32 }
 0x178   :  { %2628 = vmatmul.msk.bf16.vlgmr.msra.gmra.mxu2 %vm185_vm1, %v3427_v61 }
 0x179   :  { %v595_v1 = vpop.f32.mrf.mxu0  ;;  %1402 = vmatpush.bf16.msra.mxu2 %v1336_v34 }
 0x17a   :  { %2630 = vmatmul.msk.bf16.vlgmr.msra.gmra.mxu3 %vm185_vm1, %v3427_v61  ;;  %v3439_v6 = vadd.f32 %v595_v1, %v408_v11  ;;  %v1326_v20 = vpop.permute.xlu0 %1325  ;;  %v1312_v49 = vpop.permute.xlu2 %1311 }
 0x17b   :  { %1421 = vmatpush.bf16.msra.mxu3 %v1337_v31  ;;  %v557_v42 = vpop.f32.mrf.mxu2  ;;  %v1339_v21 = vsel %vm1327_vm6, %v1324_v2, %v1326_v20 }
 0x17c   :  { %v614_v32 = vpop.f32.mrf.mxu1  ;;  %v626_v41 = vadd.f32 %v557_v42, %v3320_v15  ;;  %2632 = vmatmul.msk.bf16.vlgmr.msra.gmra.mxu0 %vm185_vm1, %v3427_v61  ;;  %v1310_v29 = vpop.permute.xlu1 %1309 }
 0x17d   :  { %v3443_v4 = vadd.f32 %v614_v32, %v3384_v18  ;;  %v576_v16 = vpop.f32.mrf.mxu3  ;;  %1403 = vmatpush.bf16.msra.mxu2 %v1330_v8  ;;  %v1331_v18 = vsel %vm1327_vm6, %v1306_v35, %v1308_v9  ;;  %1440 = vmatpush.bf16.msra.mxu0 %v1338_v44 }
 0x17e   :  { %v3450_v11 = vadd.f32 %v576_v16, %v3323_v19 }
 0x17f   :  { %2634 = vmatmul.msk.bf16.vlgmr.msra.gmra.mxu1 %vm185_vm1, %v3427_v61  ;;  %1422 = vmatpush.bf16.msra.mxu3 %v1331_v18 }
 0x180   :  { %1459 = vmatpush.bf16.msra.mxu1 %v1339_v21 }
 0x181   :  { %v597_v15 = vpop.f32.mrf.mxu0 }
 0x182   :  { %v3456_v24 = vadd.f32 %v597_v15, %v410_v43  ;;  %v1332_v43 = vsel %vm1327_vm6, %v1308_v9, %v1310_v29  ;;  %v1530_v23 = vpop.permute.xlu2 %1529 }
 0x183   :  { %v559_v19 = vpop.f32.mrf.mxu2  ;;  %1441 = vmatpush.bf16.msra.mxu0 %v1332_v43 }
 0x184   :  { %v616_v28 = vpop.f32.mrf.mxu1  ;;  %v3461_v38 = vadd.f32 %v559_v19, %v3334_v3  ;;  %v1528_v56 = vpop.permute.xlu1 %1527 }
 0x185   :  { %v3458_v5 = vadd.f32 %v616_v28, %v429_v14  ;;  %v578_v48 = vpop.f32.mrf.mxu3  ;;  %v1526_v14 = vpop.permute.xlu0 %1525  ;;  %v1547_v31 = vsel %vm1539_vm7, %v1528_v56, %v1530_v23 }
 0x186   :  { %v3469_v25 = vadd.f32 %v578_v48, %v3336_v45  ;;  %v1546_v34 = vsel %vm1539_vm7, %v1526_v14, %v1528_v56  ;;  %v3538_v48 = vld [vmem:[%s4583_s1 + $0x68] sm:$0xff] }
 0x188   :  { %2629 = vmatmul.msk.bf16.gmra.mxu2 %vm185_vm1, %v3466_v40 }
 0x189   :  { %v600_v3 = vpop.f32.mrf.mxu0 }
 0x18a   :  { %2631 = vmatmul.msk.bf16.gmra.mxu3 %vm185_vm1, %v3466_v40  ;;  %v3477_v46 = vadd.f32 %v600_v3, %v3407_v13  ;;  %v1333_v13 = vsel %vm1327_vm6, %v1310_v29, %v1312_v49 }
 0x18b   :  { %v562_v45 = vpop.f32.mrf.mxu2  ;;  %1460 = vmatpush.bf16.msra.mxu1 %v1333_v13 }
 0x18c   :  { %v619_v27 = vpop.f32.mrf.mxu1  ;;  %v638_v37 = vadd.f32 %v562_v45, %v3351_v51  ;;  %2633 = vmatmul.msk.bf16.gmra.mxu0 %vm185_vm1, %v3466_v40  ;;  %v1514_v35 = vpop.permute.xlu1 %1513 }
 0x18d   :  { %v3480_v47 = vadd.f32 %v619_v27, %v3412_v53  ;;  %v581_v36 = vpop.f32.mrf.mxu3  ;;  %v1512_v53 = vpop.permute.xlu0 %1511 }
 0x18e   :  { %v639_v54 = vadd.f32 %v581_v36, %v3353_v12  ;;  %v1540_v18 = vsel %vm1539_vm7, %v1512_v53, %v1514_v35 }
 0x18f   :  { %2635 = vmatmul.msk.bf16.gmra.mxu1 %vm185_vm1, %v3466_v40 }
 0x191   :  { %v602_v55 = vpop.f32.mrf.mxu0 }
 0x192   :  { %v3490_v57 = vadd.f32 %v602_v55, %v3422_v30  ;;  %v3504_v30 = vld [vmem:[%s4583_s1 + $0x60] sm:$0xff] }
 0x193   :  { %v564_v22 = vpop.f32.mrf.mxu2 }
 0x194   :  { %v621_v60 = vpop.f32.mrf.mxu1  ;;  %v644_v12 = vadd.f32 %v564_v22, %v3362_v26 }
 0x195   :  { %v3493_v51 = vadd.f32 %v621_v60, %v3430_v50  ;;  %v583_v63 = vpop.f32.mrf.mxu3  ;;  %v1532_v50 = vpop.permute.xlu0 %1531 }
 0x196   :  { %v645_v0 = vadd.f32 %v583_v63, %v3364_v62  ;;  %v1548_v2 = vsel %vm1539_vm7, %v1530_v23, %v1532_v50 }
 0x198   :  { %2636 = vmatmul.msk.bf16.vlgmr.msrb.gmra.mxu2 %vm185_vm1, %v3427_v61 }
 0x199   :  { %v769_v26 = vpop.f32.mrf.mxu0  ;;  %1576 = vmatpush.bf16.msrb.mxu2 %v1546_v34 }
 0x19a   :  { %2638 = vmatmul.msk.bf16.vlgmr.msrb.gmra.mxu3 %vm185_vm1, %v3427_v61  ;;  %v3508_v1 = vadd.f32 %v769_v26, %v626_v41  ;;  %v1534_v61 = vpop.permute.xlu1 %1533  ;;  %v1516_v41 = vpop.permute.xlu2 %1515 }
 0x19b   :  { %1595 = vmatpush.bf16.msrb.mxu3 %v1547_v31  ;;  %v731_v8 = vpop.f32.mrf.mxu2  ;;  %v1549_v16 = vsel %vm1539_vm7, %v1532_v50, %v1534_v61 }
 0x19c   :  { %v788_v62 = vpop.f32.mrf.mxu1  ;;  %v836_v42 = vadd.f32 %v731_v8, %v3375_v7  ;;  %2652 = vmatmul.msk.bf16.vlgmr.msrb.gmra.mxu0 %vm185_vm1, %v3504_v30 }
 0x19d   :  { %v3512_v32 = vadd.f32 %v788_v62, %v3450_v11  ;;  %v750_v44 = vpop.f32.mrf.mxu3  ;;  %1614 = vmatpush.bf16.msrb.mxu0 %v1548_v2  ;;  %1577 = vmatpush.bf16.msrb.mxu2 %v1540_v18  ;;  %v1541_v11 = vsel %vm1539_vm7, %v1514_v35, %v1516_v41  ;;  %v1520_v14 = vpop.permute.xlu0 %1519 }
 0x19e   :  { %v837_v9 = vadd.f32 %v750_v44, %v3378_v10 }
 0x19f   :  { %2654 = vmatmul.msk.bf16.vlgmr.msrb.gmra.mxu1 %vm185_vm1, %v3504_v30  ;;  %1596 = vmatpush.bf16.msrb.mxu3 %v1541_v11 }
 0x1a0   :  { %1633 = vmatpush.bf16.msrb.mxu1 %v1549_v16 }
 0x1a1   :  { %v771_v7 = vpop.f32.mrf.mxu0 }
 0x1a2   :  { %v3524_v20 = vadd.f32 %v771_v7, %v3461_v38  ;;  %v1536_v36 = vpop.permute.xlu1 %1535 }
 0x1a3   :  { %v733_v15 = vpop.f32.mrf.mxu2  ;;  %v1550_v63 = vsel %vm1539_vm7, %v1534_v61, %v1536_v36 }
 0x1a4   :  { %v790_v21 = vpop.f32.mrf.mxu1  ;;  %v842_v28 = vadd.f32 %v733_v15, %v3390_v33  ;;  %v1518_v33 = vpop.permute.xlu2 %1517 }
 0x1a5   :  { %v3527_v10 = vadd.f32 %v790_v21, %v3469_v25  ;;  %v752_v19 = vpop.f32.mrf.mxu3  ;;  %v1522_v22 = vpop.permute.xlu0 %1521  ;;  %v1543_v23 = vsel %vm1539_vm7, %v1518_v33, %v1520_v14 }
 0x1a6   :  { %v3531_v29 = vadd.f32 %v752_v19, %v3394_v39  ;;  %1634 = vmatpush.bf16.msrb.mxu1 %v1543_v23  ;;  %v1544_v34 = vsel %vm1539_vm7, %v1520_v14, %v1522_v22 }
 0x1a8   :  { %2637 = vmatmul.msk.bf16.gmra.mxu2 %vm185_vm1, %v3466_v40 }
 0x1a9   :  { %v774_v38 = vpop.f32.mrf.mxu0 }
 0x1aa   :  { %2639 = vmatmul.msk.bf16.gmra.mxu3 %vm185_vm1, %v3466_v40  ;;  %v3542_v25 = vadd.f32 %v774_v38, %v638_v37  ;;  %v1542_v40 = vsel %vm1539_vm7, %v1516_v41, %v1518_v33 }
 0x1ab   :  { %v736_v39 = vpop.f32.mrf.mxu2  ;;  %1615 = vmatpush.bf16.msrb.mxu0 %v1542_v40 }
 0x1ac   :  { %v793_v43 = vpop.f32.mrf.mxu1  ;;  %v848_v27 = vadd.f32 %v736_v39, %v3402_v17  ;;  %2653 = vmatmul.msk.bf16.gmra.mxu0 %vm185_vm1, %v3538_v48  ;;  %v1538_v55 = vpop.permute.xlu2 %1537 }
 0x1ad   :  { %v3544_v3 = vadd.f32 %v793_v43, %v639_v54  ;;  %v755_v45 = vpop.f32.mrf.mxu3  ;;  %v1551_v35 = vsel %vm1539_vm7, %v1536_v36, %v1538_v55  ;;  %v1740_v44 = vpop.permute.xlu0 %1739 }
 0x1ae   :  { %v849_v49 = vadd.f32 %v755_v45, %v3404_v52 }
 0x1af   :  { %2655 = vmatmul.msk.bf16.gmra.mxu1 %vm185_vm1, %v3538_v48 }
 0x1b1   :  { %v776_v37 = vpop.f32.mrf.mxu0 }
 0x1b2   :  { %v3553_v56 = vadd.f32 %v776_v37, %v644_v12 }
 0x1b3   :  { %v738_v17 = vpop.f32.mrf.mxu2 }
 0x1b4   :  { %v795_v54 = vpop.f32.mrf.mxu1  ;;  %v854_v53 = vadd.f32 %v738_v17, %v3416_v58  ;;  %v1524_v58 = vpop.permute.xlu1 %1523 }
 0x1b5   :  { %v3555_v13 = vadd.f32 %v795_v54, %v645_v0  ;;  %v757_v60 = vpop.f32.mrf.mxu3  ;;  %v1738_v8 = vpop.permute.xlu2 %1737 }
 0x1b6   :  { %v855_v52 = vadd.f32 %v757_v60, %v3418_v59  ;;  %v1758_v61 = vsel %vm1751_vm8, %v1738_v8, %v1740_v44  ;;  %v1726_v19 = vpop.permute.xlu0 %1725 }
 0x1b8   :  { %2656 = vmatmul.msk.bf16.vlgmr.msra.gmra.mxu2 %vm185_vm1, %v3504_v30 }
 0x1b9   :  { %v943_v12 = vpop.f32.mrf.mxu0  ;;  %1652 = vmatpush.bf16.msra.mxu2 %v1550_v63 }
 0x1ba   :  { %2658 = vmatmul.msk.bf16.vlgmr.msra.gmra.mxu3 %vm185_vm1, %v3504_v30  ;;  %v3566_v0 = vadd.f32 %v943_v12, %v836_v42  ;;  %v1545_v42 = vsel %vm1539_vm7, %v1522_v22, %v1524_v58 }
 0x1bb   :  { %1671 = vmatpush.bf16.msra.mxu3 %v1551_v35  ;;  %v807_v26 = vpop.f32.mrf.mxu2 }
 0x1bc   :  { %v962_v59 = vpop.f32.mrf.mxu1  ;;  %v840_v50 = vadd.f32 %v807_v26, %v3439_v6  ;;  %2660 = vmatmul.msk.bf16.vlgmr.msra.gmra.mxu0 %vm185_vm1, %v3504_v30 }
 0x1bd   :  { %v3569_v31 = vadd.f32 %v962_v59, %v837_v9  ;;  %v826_v62 = vpop.f32.mrf.mxu3  ;;  %1653 = vmatpush.bf16.msra.mxu2 %v1544_v34  ;;  %1788 = vmatpush.bf16.msra.mxu0 %v1758_v61  ;;  %v1742_v9 = vpop.permute.xlu1 %1741 }
 0x1be   :  { %v3575_v2 = vadd.f32 %v826_v62, %v3443_v4  ;;  %v1759_v4 = vsel %vm1751_vm8, %v1740_v44, %v1742_v9  ;;  %v1724_v15 = vpop.permute.xlu2 %1723  ;;  %v1746_v40 = vpop.permute.xlu0 %1745 }
 0x1bf   :  { %2662 = vmatmul.msk.bf16.vlgmr.msra.gmra.mxu1 %vm185_vm1, %v3504_v30  ;;  %1672 = vmatpush.bf16.msra.mxu3 %v1545_v42 }
 0x1c0   :  { %1807 = vmatpush.bf16.msra.mxu1 %v1759_v4  ;;  %v3645_v4 = vld [vmem:[%s4583_s1 + $0x78] sm:$0xff] }
 0x1c1   :  { %v945_v6 = vpop.f32.mrf.mxu0 }
 0x1c2   :  { %v3581_v41 = vadd.f32 %v945_v6, %v842_v28 }
 0x1c3   :  { %v809_v30 = vpop.f32.mrf.mxu2 }
 0x1c4   :  { %v964_v16 = vpop.f32.mrf.mxu1  ;;  %v846_v11 = vadd.f32 %v809_v30, %v3456_v24 }
 0x1c5   :  { %v3585_v18 = vadd.f32 %v964_v16, %v3531_v29  ;;  %v828_v7 = vpop.f32.mrf.mxu3  ;;  %v1728_v39 = vpop.permute.xlu1 %1727 }
 0x1c6   :  { %v847_v21 = vadd.f32 %v828_v7, %v3458_v5  ;;  %v1744_v54 = vpop.permute.xlu2 %1743  ;;  %v1753_v60 = vsel %vm1751_vm8, %v1726_v19, %v1728_v39  ;;  %v1748_v23 = vpop.permute.xlu0 %1747 }
 0x1c7   :  { %1808 = vmatpush.bf16.msra.mxu1 %v1753_v60  ;;  %v1761_v22 = vsel %vm1751_vm8, %v1744_v54, %v1746_v40  ;;  %v1762_v59 = vsel %vm1751_vm8, %v1746_v40, %v1748_v23 }
 0x1c8   :  { %2657 = vmatmul.msk.bf16.gmra.mxu2 %vm185_vm1, %v3538_v48 }
 0x1c9   :  { %v948_v28 = vpop.f32.mrf.mxu0 }
 0x1ca   :  { %2659 = vmatmul.msk.bf16.gmra.mxu3 %vm185_vm1, %v3538_v48  ;;  %v3593_v38 = vadd.f32 %v948_v28, %v848_v27 }
 0x1cb   :  { %v812_v33 = vpop.f32.mrf.mxu2 }
 0x1cc   :  { %v967_v29 = vpop.f32.mrf.mxu1  ;;  %v852_v24 = vadd.f32 %v812_v33, %v3477_v46  ;;  %2661 = vmatmul.msk.bf16.gmra.mxu0 %vm185_vm1, %v3538_v48  ;;  %v1752_v46 = vsel %vm1751_vm8, %v1724_v15, %v1726_v19 }
 0x1cd   :  { %v3595_v43 = vadd.f32 %v967_v29, %v849_v49  ;;  %v831_v14 = vpop.f32.mrf.mxu3  ;;  %1789 = vmatpush.bf16.msra.mxu0 %v1752_v46  ;;  %v4588_v46 = vmov 0  }
 0x1ce   :  { %v853_v5 = vadd.f32 %v831_v14, %v3480_v47  ;;  %v3612_v47 = vld [vmem:[%s4583_s1 + $0x70] sm:$0xff]  ;;  %v1732_v62 = vpop.permute.xlu2 %1731  ;;  %2743 = vset.pattern.permute.xlu2 %v4588_v46  ;;  %2745 = vset.pattern.permute.xlu1 %v4588_v46 }
 0x1cf   :  { %2663 = vmatmul.msk.bf16.gmra.mxu1 %vm185_vm1, %v3538_v48  ;;  %2744 = vset.pattern.permute.xlu0 %v4588_v46 }
 0x1d1   :  { %v950_v45 = vpop.f32.mrf.mxu0 }
 0x1d2   :  { %v3603_v27 = vadd.f32 %v950_v45, %v854_v53  ;;  %v1730_v53 = vpop.permute.xlu1 %1729 }
 0x1d3   :  { %v814_v36 = vpop.f32.mrf.mxu2  ;;  %v1754_v35 = vsel %vm1751_vm8, %v1728_v39, %v1730_v53  ;;  %v1755_v8 = vsel %vm1751_vm8, %v1730_v53, %v1732_v62 }
 0x1d4   :  { %v969_v37 = vpop.f32.mrf.mxu1  ;;  %v858_v17 = vadd.f32 %v814_v36, %v3490_v57 }
 0x1d5   :  { %v3605_v49 = vadd.f32 %v969_v37, %v855_v52  ;;  %v833_v55 = vpop.f32.mrf.mxu3  ;;  %v1760_v52 = vsel %vm1751_vm8, %v1742_v9, %v1744_v54  ;;  %v2147_v54 = vld [vmem:[%s4584_s2] sm:$0xff] }
 0x1d6   :  { %v859_v48 = vadd.f32 %v833_v55, %v3493_v51  ;;  %v1734_v15 = vpop.permute.xlu2 %1733  ;;  %2153 = vperm.xlu2 %2743, %v2147_v54   ;;  %v2759_v54 = vld [vmem:[%s4582_s0 + $0x20] sm:$0xff] }
 0x1d7   :  { %v1756_v33 = vsel %vm1751_vm8, %v1732_v62, %v1734_v15  ;;  %v2196_v62 = vld [vmem:[%s4585_s3 + $0x8] sm:$0xff] }
 0x1d8   :  { %2676 = vmatmul.msk.bf16.vlgmr.msrb.gmra.mxu2 %vm185_vm1, %v3612_v47 }
 0x1d9   :  { %v1019_v57 = vpop.f32.mrf.mxu0  ;;  %1826 = vmatpush.bf16.msrb.mxu2 %v1760_v52 }
 0x1da   :  { %2678 = vmatmul.msk.bf16.vlgmr.msrb.gmra.mxu3 %vm185_vm1, %v3612_v47  ;;  %v3622_v63 = vadd.f32 %v1019_v57, %v840_v50  ;;  %v2149_v57 = vld [vmem:[%s4584_s2 + $0x10] sm:$0xff] }
 0x1db   :  { %1845 = vmatpush.bf16.msrb.mxu3 %v1761_v22  ;;  %v981_v58 = vpop.f32.mrf.mxu2  ;;  %2163 = vperm.xlu1 %2745, %v2149_v57   ;;  %v2762_v57 = vld [vmem:[%s4582_s0 + $0x38] sm:$0xff] }
 0x1dc   :  { %v1038_v51 = vpop.f32.mrf.mxu1  ;;  %v1050_v34 = vadd.f32 %v981_v58, %v3508_v1  ;;  %2680 = vmatmul.msk.bf16.vlgmr.msrb.gmra.mxu0 %vm185_vm1, %v3612_v47 }
 0x1dd   :  { %v3626_v12 = vadd.f32 %v1038_v51, %v3575_v2  ;;  %v1000_v26 = vpop.f32.mrf.mxu3  ;;  %1827 = vmatpush.bf16.msrb.mxu2 %v1754_v35  ;;  %v1750_v2 = vpop.permute.xlu1 %1749  ;;  %1864 = vmatpush.bf16.msrb.mxu0 %v1762_v59 }
 0x1de   :  { %v1051_v50 = vadd.f32 %v1000_v26, %v3512_v32  ;;  %v1763_v42 = vsel %vm1751_vm8, %v1748_v23, %v1750_v2  ;;  %v2148_v26 = vld [vmem:[%s4584_s2 + $0x8] sm:$0xff] }
 0x1df   :  { %2682 = vmatmul.msk.bf16.vlgmr.msrb.gmra.mxu1 %vm185_vm1, %v3612_v47  ;;  %1846 = vmatpush.bf16.msrb.mxu3 %v1755_v8 }
 0x1e0   :  { %1883 = vmatpush.bf16.msrb.mxu1 %v1763_v42  ;;  %2158 = vperm.xlu0 %2744, %v2148_v26  }
 0x1e1   :  { %v1021_v1 = vpop.f32.mrf.mxu0  ;;  %1865 = vmatpush.bf16.msrb.mxu0 %v1756_v33  ;;  %v2756_v33 = vld [vmem:[%s4582_s0 + $0x8] sm:$0xff] }
 0x1e2   :  { %v3637_v44 = vadd.f32 %v1021_v1, %v846_v11 }
 0x1e3   :  { %v983_v9 = vpop.f32.mrf.mxu2 }
 0x1e4   :  { %v1040_v61 = vpop.f32.mrf.mxu1  ;;  %v1056_v32 = vadd.f32 %v983_v9, %v3524_v20 }
 0x1e5   :  { %v3639_v6 = vadd.f32 %v1040_v61, %v847_v21  ;;  %v1002_v16 = vpop.f32.mrf.mxu3 }
 0x1e6   :  { %v1057_v30 = vadd.f32 %v1002_v16, %v3527_v10  ;;  %v2198_v16 = vld [vmem:[%s4585_s3 + $0x18] sm:$0xff] }
 0x1e8   :  { %2677 = vmatmul.msk.bf16.gmra.mxu2 %vm185_vm1, %v3645_v4 }
 0x1e9   :  { %v1024_v11 = vpop.f32.mrf.mxu0 }
 0x1ea   :  { %2679 = vmatmul.msk.bf16.gmra.mxu3 %vm185_vm1, %v3645_v4  ;;  %v3652_v7 = vadd.f32 %v1024_v11, %v852_v24 }
 0x1eb   :  { %v986_v28 = vpop.f32.mrf.mxu2 }
 0x1ec   :  { %v1043_v21 = vpop.f32.mrf.mxu1  ;;  %v1062_v19 = vadd.f32 %v986_v28, %v3542_v25  ;;  %2681 = vmatmul.msk.bf16.gmra.mxu0 %vm185_vm1, %v3645_v4 }
 0x1ed   :  { %v3654_v20 = vadd.f32 %v1043_v21, %v853_v5  ;;  %v1005_v29 = vpop.f32.mrf.mxu3  ;;  %v1736_v5 = vpop.permute.xlu0 %1735 }
 0x1ee   :  { %v1063_v10 = vadd.f32 %v1005_v29, %v3544_v3  ;;  %v1757_v36 = vsel %vm1751_vm8, %v1734_v15, %v1736_v5 }
 0x1ef   :  { %2683 = vmatmul.msk.bf16.gmra.mxu1 %vm185_vm1, %v3645_v4 }
 0x1f0   :  { %1884 = vmatpush.bf16.msrb.mxu1 %v1757_v36  ;;  %v2758_v36 = vld [vmem:[%s4582_s0 + $0x30] sm:$0xff] }
 0x1f1   :  { %v1026_v39 = vpop.f32.mrf.mxu0 }
 0x1f2   :  { %v3663_v24 = vadd.f32 %v1026_v39, %v858_v17  ;;  %v2757_v39 = vld [vmem:[%s4582_s0 + $0x10] sm:$0xff] }
 0x1f3   :  { %v988_v25 = vpop.f32.mrf.mxu2 }
 0x1f4   :  { %v1045_v14 = vpop.f32.mrf.mxu1  ;;  %v3668_v40 = vadd.f32 %v988_v25, %v3553_v56  ;;  %v3684_v56 = vld [vmem:[%s4583_s1 + $0x80] sm:$0xff] }
 0x1f5   :  { %v3665_v45 = vadd.f32 %v1045_v14, %v859_v48  ;;  %v1007_v37 = vpop.f32.mrf.mxu3 }
 0x1f6   :  { %v3671_v3 = vadd.f32 %v1007_v37, %v3555_v13 }
 0x1f8   :  { %2684 = vmatmul.msk.bf16.vlgmr.msra.gmra.mxu2 %vm185_vm1, %v3612_v47 }
 0x1f9   :  { %v1193_v13 = vpop.f32.mrf.mxu0 }
 0x1fa   :  { %2686 = vmatmul.msk.bf16.vlgmr.msra.gmra.mxu3 %vm185_vm1, %v3612_v47  ;;  %v3689_v17 = vadd.f32 %v1193_v13, %v1050_v34  ;;  %v2150_v47 = vld [vmem:[%s4584_s2 + $0x18] sm:$0xff] }
 0x1fb   :  { %v1155_v53 = vpop.f32.mrf.mxu2  ;;  %2168 = vperm.xlu2 %2743, %v2150_v47   ;;  %v2761_v47 = vld [vmem:[%s4582_s0 + $0x48] sm:$0xff] }
 0x1fc   :  { %v1212_v55 = vpop.f32.mrf.mxu1  ;;  %v1260_v60 = vadd.f32 %v1155_v53, %v3566_v0  ;;  %2700 = vmatmul.msk.bf16.vlgmr.msra.gmra.mxu0 %vm185_vm1, %v3684_v56 }
 0x1fd   :  { %v3691_v48 = vadd.f32 %v1212_v55, %v1051_v50  ;;  %v1174_v52 = vpop.f32.mrf.mxu3  ;;  %v2195_v50 = vld [vmem:[%s4585_s3] sm:$0xff] }
 0x1fe   :  { %v1261_v22 = vadd.f32 %v1174_v52, %v3569_v31  ;;  %2201 = vperm.xlu1 %2745, %v2195_v50   ;;  %v2765_v50 = vld [vmem:[%s4582_s0 + $0x50] sm:$0xff] }
 0x1ff   :  { %2702 = vmatmul.msk.bf16.vlgmr.msra.gmra.mxu1 %vm185_vm1, %v3684_v56 }
 0x201   :  { %v1195_v0 = vpop.f32.mrf.mxu0 }
 0x202   :  { %v3705_v23 = vadd.f32 %v1195_v0, %v1056_v32  ;;  %v2763_v0 = vld [vmem:[%s4582_s0 + $0x40] sm:$0xff] }
 0x203   :  { %v1157_v31 = vpop.f32.mrf.mxu2  ;;  %2206 = vperm.xlu2 %2743, %v2196_v62   ;;  %v2764_v62 = vld [vmem:[%s4582_s0 + $0x60] sm:$0xff] }
 0x204   :  { %v1214_v51 = vpop.f32.mrf.mxu1  ;;  %v1266_v58 = vadd.f32 %v1157_v31, %v3581_v41  ;;  %v3725_v41 = vld [vmem:[%s4583_s1 + $0x88] sm:$0xff] }
 0x205   :  { %v3707_v35 = vadd.f32 %v1214_v51, %v1057_v30  ;;  %v1176_v59 = vpop.f32.mrf.mxu3 }
 0x206   :  { %v1267_v34 = vadd.f32 %v1176_v59, %v3585_v18 }
 0x208   :  { %2685 = vmatmul.msk.bf16.gmra.mxu2 %vm185_vm1, %v3645_v4 }
 0x209   :  { %v1198_v18 = vpop.f32.mrf.mxu0 }
 0x20a   :  { %2687 = vmatmul.msk.bf16.gmra.mxu3 %vm185_vm1, %v3645_v4  ;;  %v3729_v8 = vadd.f32 %v1198_v18, %v1062_v19  ;;  %v2197_v4 = vld [vmem:[%s4585_s3 + $0x10] sm:$0xff] }
 0x20b   :  { %v1160_v1 = vpop.f32.mrf.mxu2  ;;  %2211 = vperm.xlu1 %2745, %v2197_v4   ;;  %2216 = vperm.xlu2 %2743, %v2198_v16   ;;  %v2767_v16 = vld [vmem:[%s4582_s0 + $0x78] sm:$0xff]  ;;  %v2768_v4 = vld [vmem:[%s4582_s0 + $0x68] sm:$0xff] }
 0x20c   :  { %v1217_v2 = vpop.f32.mrf.mxu1  ;;  %v1272_v61 = vadd.f32 %v1160_v1, %v3593_v38  ;;  %2701 = vmatmul.msk.bf16.gmra.mxu0 %vm185_vm1, %v3725_v41  ;;  %v2754_v38 = vld [vmem:[%s4582_s0] sm:$0xff] }
 0x20d   :  { %v3731_v42 = vadd.f32 %v1217_v2, %v1063_v10  ;;  %v1179_v9 = vpop.f32.mrf.mxu3  ;;  %2343 = vrot.lane.b32.xlu0 %v2754_v38, %s2785_s28  ;;  %v2755_v10 = vld [vmem:[%s4582_s0 + $0x18] sm:$0xff]  ;;  %v2769_v38 = vld [vmem:[%s4582_s0 + $0x70] sm:$0xff] }
 0x20e   :  { %v1273_v32 = vadd.f32 %v1179_v9, %v3595_v43 }
 0x20f   :  { %2703 = vmatmul.msk.bf16.gmra.mxu1 %vm185_vm1, %v3725_v41 }
 0x211   :  { %v1200_v43 = vpop.f32.mrf.mxu0 }
 0x212   :  { %v3750_v30 = vadd.f32 %v1200_v43, %v3668_v40 }
 0x213   :  { %v1162_v15 = vpop.f32.mrf.mxu2  ;;  %2345 = vrot.lane.b32.xlu1 %v2756_v33, %s2785_s28  ;;  %2347 = vrot.lane.b32.xlu2 %v2757_v39, %s2785_s28  ;;  %v2771_v33 = vld [vmem:[%s4582_s0 + $0x80] sm:$0xff] }
 0x214   :  { %v1219_v11 = vpop.f32.mrf.mxu1  ;;  %v1278_v28 = vadd.f32 %v1162_v15, %v3603_v27 }
 0x215   :  { %v3753_v21 = vadd.f32 %v1219_v11, %v3671_v3  ;;  %v1181_v19 = vpop.f32.mrf.mxu3  ;;  %2349 = vrot.lane.b32.xlu0 %v2755_v10, %s2785_s28  ;;  %v2770_v10 = vld [vmem:[%s4582_s0 + $0x90] sm:$0xff] }
 0x216   :  { %v1279_v29 = vadd.f32 %v1181_v19, %v3605_v49 }
 0x218   :  { %2704 = vmatmul.msk.bf16.vlgmr.msrb.gmra.mxu2 %vm185_vm1, %v3684_v56 }
 0x219   :  { %v1367_v27 = vpop.f32.mrf.mxu0 }
 0x21a   :  { %2706 = vmatmul.msk.bf16.vlgmr.msrb.gmra.mxu3 %vm185_vm1, %v3684_v56  ;;  %v3773_v49 = vadd.f32 %v1367_v27, %v1260_v60 }
 0x21b   :  { %v1231_v25 = vpop.f32.mrf.mxu2  ;;  %2351 = vrot.lane.b32.xlu1 %v2759_v54, %s2785_s28  ;;  %v2774_v54 = vld [vmem:[%s4582_s0 + $0x98] sm:$0xff] }
 0x21c   :  { %v1386_v14 = vpop.f32.mrf.mxu1  ;;  %v1264_v40 = vadd.f32 %v1231_v25, %v3622_v63  ;;  %2708 = vmatmul.msk.bf16.vlgmr.msrb.gmra.mxu0 %vm185_vm1, %v3684_v56  ;;  %v2760_v63 = vld [vmem:[%s4582_s0 + $0x28] sm:$0xff] }
 0x21d   :  { %v3775_v5 = vadd.f32 %v1386_v14, %v1261_v22  ;;  %v1250_v37 = vpop.f32.mrf.mxu3  ;;  %2355 = vrot.lane.b32.xlu0 %v2758_v36, %s2785_s28  ;;  %2353 = vrot.lane.b32.xlu2 %v2760_v63, %s2785_s28  ;;  %v2773_v36 = vld [vmem:[%s4582_s0 + $0xa8] sm:$0xff] }
 0x21e   :  { %v1265_v3 = vadd.f32 %v1250_v37, %v3626_v12 }
 0x21f   :  { %2710 = vmatmul.msk.bf16.vlgmr.msrb.gmra.mxu1 %vm185_vm1, %v3684_v56 }
 0x221   :  { %v1369_v12 = vpop.f32.mrf.mxu0 }
 0x222   :  { %v3795_v56 = vadd.f32 %v1369_v12, %v1266_v58 }
 0x223   :  { %v1233_v53 = vpop.f32.mrf.mxu2  ;;  %2357 = vrot.lane.b32.xlu1 %v2762_v57, %s2785_s28  ;;  %v2777_v57 = vld [vmem:[%s4582_s0 + $0xb0] sm:$0xff] }
 0x224   :  { %v1388_v13 = vpop.f32.mrf.mxu1  ;;  %v1270_v60 = vadd.f32 %v1233_v53, %v3637_v44 }
 0x225   :  { %v3797_v55 = vadd.f32 %v1388_v13, %v1267_v34  ;;  %v1252_v52 = vpop.f32.mrf.mxu3  ;;  %2361 = vrot.lane.b32.xlu0 %v2761_v47, %s2785_s28  ;;  %2359 = vrot.lane.b32.xlu2 %v2763_v0, %s2785_s28  ;;  %v2776_v47 = vld [vmem:[%s4582_s0 + $0xc0] sm:$0xff] }
 0x226   :  { %v1271_v22 = vadd.f32 %v1252_v52, %v3639_v6 }
 0x228   :  { %2705 = vmatmul.msk.bf16.gmra.mxu2 %vm185_vm1, %v3725_v41 }
 0x229   :  { %v1372_v44 = vpop.f32.mrf.mxu0 }
 0x22a   :  { %2707 = vmatmul.msk.bf16.gmra.mxu3 %vm185_vm1, %v3725_v41  ;;  %v3817_v6 = vadd.f32 %v1372_v44, %v1272_v61 }
 0x22b   :  { %v1236_v58 = vpop.f32.mrf.mxu2  ;;  %2363 = vrot.lane.b32.xlu1 %v2765_v50, %s2785_s28 }
 0x22c   :  { %v1391_v51 = vpop.f32.mrf.mxu1  ;;  %v1276_v59 = vadd.f32 %v1236_v58, %v3652_v7  ;;  %2709 = vmatmul.msk.bf16.gmra.mxu0 %vm185_vm1, %v3725_v41  ;;  %v2766_v7 = vld [vmem:[%s4582_s0 + $0x58] sm:$0xff] }
 0x22d   :  { %v3819_v31 = vadd.f32 %v1391_v51, %v1273_v32  ;;  %v1255_v34 = vpop.f32.mrf.mxu3  ;;  %2367 = vrot.lane.b32.xlu0 %v2764_v62, %s2785_s28  ;;  %2365 = vrot.lane.b32.xlu2 %v2766_v7, %s2785_s28 }
 0x22e   :  { %v1277_v26 = vadd.f32 %v1255_v34, %v3654_v20 }
 0x22f   :  { %2711 = vmatmul.msk.bf16.gmra.mxu1 %vm185_vm1, %v3725_v41 }
 0x231   :  { %v1374_v20 = vpop.f32.mrf.mxu0 }
 0x232   :  { %v3839_v41 = vadd.f32 %v1374_v20, %v1278_v28 }
 0x233   :  { %v1238_v1 = vpop.f32.mrf.mxu2  ;;  %2369 = vrot.lane.b32.xlu1 %v2768_v4, %s2785_s28 }
 0x234   :  { %v1393_v18 = vpop.f32.mrf.mxu1  ;;  %v1282_v61 = vadd.f32 %v1238_v1, %v3663_v24 }
 0x235   :  { %v3841_v2 = vadd.f32 %v1393_v18, %v1279_v29  ;;  %v1257_v9 = vpop.f32.mrf.mxu3  ;;  %2373 = vrot.lane.b32.xlu0 %v2767_v16, %s2785_s28  ;;  %2371 = vrot.lane.b32.xlu2 %v2769_v38, %s2785_s28 }
 0x236   :  { %v1283_v32 = vadd.f32 %v1257_v9, %v3665_v45 }
 0x239   :  { %v1443_v24 = vpop.f32.mrf.mxu0 }
 0x23a   :  { %v3857_v45 = vadd.f32 %v1443_v24, %v1264_v40 }
 0x23b   :  { %v1405_v15 = vpop.f32.mrf.mxu2  ;;  %2375 = vrot.lane.b32.xlu1 %v2771_v33, %s2785_s28 }
 0x23c   :  { %v1462_v43 = vpop.f32.mrf.mxu1  ;;  %v3862_v28 = vadd.f32 %v1405_v15, %v3689_v17  ;;  %v2772_v17 = vld [vmem:[%s4582_s0 + $0x88] sm:$0xff] }
 0x23d   :  { %v3859_v11 = vadd.f32 %v1462_v43, %v1265_v3  ;;  %v1424_v19 = vpop.f32.mrf.mxu3  ;;  %2379 = vrot.lane.b32.xlu0 %v2770_v10, %s2785_s28  ;;  %2377 = vrot.lane.b32.xlu2 %v2772_v17, %s2785_s28 }
 0x23e   :  { %v3865_v29 = vadd.f32 %v1424_v19, %v3691_v48 }
 0x241   :  { %v1445_v48 = vpop.f32.mrf.mxu0 }
 0x242   :  { %v3879_v39 = vadd.f32 %v1445_v48, %v1270_v60 }
 0x243   :  { %v1407_v25 = vpop.f32.mrf.mxu2  ;;  %2381 = vrot.lane.b32.xlu1 %v2774_v54, %s2785_s28 }
 0x244   :  { %v1464_v27 = vpop.f32.mrf.mxu1  ;;  %v3884_v40 = vadd.f32 %v1407_v25, %v3705_v23  ;;  %v2775_v23 = vld [vmem:[%s4582_s0 + $0xa0] sm:$0xff] }
 0x245   :  { %v3881_v14 = vadd.f32 %v1464_v27, %v1271_v22  ;;  %v1426_v37 = vpop.f32.mrf.mxu3  ;;  %2385 = vrot.lane.b32.xlu0 %v2773_v36, %s2785_s28  ;;  %2383 = vrot.lane.b32.xlu2 %v2775_v23, %s2785_s28 }
 0x246   :  { %v3887_v3 = vadd.f32 %v1426_v37, %v3707_v35 }
 0x249   :  { %v1448_v35 = vpop.f32.mrf.mxu0 }
 0x24a   :  { %v3901_v63 = vadd.f32 %v1448_v35, %v1276_v59 }
 0x24b   :  { %v1410_v53 = vpop.f32.mrf.mxu2  ;;  %2387 = vrot.lane.b32.xlu1 %v2777_v57, %s2785_s28  ;;  %v1920_v57 = vld [vmem:[%s4586_s4] sm:$0x3f] }
 0x24c   :  { %v1467_v12 = vpop.f32.mrf.mxu1  ;;  %v3906_v60 = vadd.f32 %v1410_v53, %v3729_v8  ;;  %v2778_v8 = vld [vmem:[%s4582_s0 + $0xb8] sm:$0xff]  ;;  %vm1921_vm9 = vcmp.gt.f32.partialorder %v1920_v57, 0.0 }
 0x24d   :  { %v3903_v13 = vadd.f32 %v1467_v12, %v1277_v26  ;;  %v1429_v52 = vpop.f32.mrf.mxu3  ;;  %2391 = vrot.lane.b32.xlu0 %v2776_v47, %s2785_s28  ;;  %2389 = vrot.lane.b32.xlu2 %v2778_v8, %s2785_s28  ;;  %v3953_v24 = vpop.permute.xlu1 %2163 }
 0x24e   :  { %v3909_v22 = vadd.f32 %v1429_v52, %v3731_v42  ;;  %4602 = vst [vmem:[#allocation6_spill] sm:$0xff] %v3953_v24 }
 0x251   :  { %v1450_v42 = vpop.f32.mrf.mxu0 }
 0x252   :  { %v3923_v0 = vadd.f32 %v1450_v42, %v1282_v61  ;;  %v3941_v61 = vpop.permute.xlu2 %2153  ;;  %v3965_v17 = vpop.permute.xlu0 %2158 }
 0x253   :  { %v1412_v58 = vpop.f32.mrf.mxu2  ;;  %4600 = vst [vmem:[#allocation4_spill] sm:$0xff] %v3941_v61 }
 0x254   :  { %4598 = vst [vmem:[#allocation2_spill] sm:$0xff] %v3923_v0  ;;  %v1469_v44 = vpop.f32.mrf.mxu1  ;;  %v3928_v59 = vadd.f32 %v1412_v58, %v3750_v30 }
 0x255   :  { %v3925_v51 = vadd.f32 %v1469_v44, %v1283_v32  ;;  %v1431_v34 = vpop.f32.mrf.mxu3  ;;  %4605 = vst [vmem:[#allocation9_spill] sm:$0xff] %v3965_v17 }
 0x256   :  { %v3931_v26 = vadd.f32 %v1431_v34, %v3753_v21 }
 0x257   :  { %4599 = vst [vmem:[#allocation3_spill] sm:$0xff] %v3925_v51 }
 0x259   :  { %v3933_v62 = vpop.f32.mrf.mxu0 }
 0x25a   :  { %v3951_v38 = vpop.permute.xlu2 %2168 }
 0x25b   :  { %v1579_v7 = vpop.f32.mrf.mxu2  ;;  %4601 = vst [vmem:[#allocation5_spill] sm:$0xff] %v3951_v38 }
 0x25c   :  { %v3935_v50 = vpop.f32.mrf.mxu1 }
 0x25d   :  { %v1598_v20 = vpop.f32.mrf.mxu3 }
 0x25e   :  { %v1685_v0 = vadd.f32 %v1598_v20, %v3775_v5 }
 0x261   :  { %v3937_v18 = vpop.f32.mrf.mxu0 }
 0x262   :  { %v3963_v33 = vpop.permute.xlu2 %2206 }
 0x263   :  { %v1581_v9 = vpop.f32.mrf.mxu2  ;;  %4604 = vst [vmem:[#allocation8_spill] sm:$0xff] %v3963_v33  ;;  %v4612_v33 = vmov 0  }
 0x264   :  { %v3939_v1 = vpop.f32.mrf.mxu1  ;;  %v4002_v17 = vsel %vm1921_vm9, 1, %v4612_v33 }
 0x265   :  { %v1600_v32 = vpop.f32.mrf.mxu3  ;;  %v1923_v57 = vperm.slane %v4002_v17, 0  ;;  %v1924_v61 = vperm.slane %v4002_v17, 1 }
 0x267   :  { %vm4019_vm10 = vcmp.eq.s32.totalorder %v1923_v57, 1  ;;  %vm4033_vm11 = vcmp.eq.s32.totalorder %v1924_v61, 1  ;;  %v1691_v61 = vadd.f32 %v1600_v32, %v3797_v55 }
 0x269   :  { %v3943_v30 = vpop.f32.mrf.mxu0 }
 0x26a   :  { %v3973_v54 = vpop.permute.xlu2 %2216 }
 0x26b   :  { %v3947_v21 = vpop.f32.mrf.mxu2  ;;  %4607 = vst [vmem:[#allocation11_spill] sm:$0xff] %v3973_v54 }
 0x26c   :  { %v3945_v16 = vpop.f32.mrf.mxu1 }
 0x26d   :  { %v3949_v4 = vpop.f32.mrf.mxu3 }
 0x26e   :  { %v1697_v55 = vadd.f32 %v3949_v4, %v3819_v31 }
 0x270   :  { %v3967_v48 = vpop.permute.xlu1 %2201 }
 0x271   :  { %v3955_v43 = vpop.f32.mrf.mxu0  ;;  %4606 = vst [vmem:[#allocation10_spill] sm:$0xff] %v3967_v48  ;;  %v1684_v48 = vadd.f32 %v1579_v7, %v3773_v49 }
 0x272   :  { %v2348_v58 = vpop.permute.xlu2 %2347 }
 0x273   :  { %v3959_v19 = vpop.f32.mrf.mxu2 }
 0x274   :  { %v3957_v15 = vpop.f32.mrf.mxu1 }
 0x275   :  { %4603 = vst [vmem:[#allocation7_spill] sm:$0xff] %v3957_v15  ;;  %v3961_v10 = vpop.f32.mrf.mxu3 }
 0x279   :  { %v1791_v27 = vpop.f32.mrf.mxu0 }
 0x27b   :  { %v3969_v37 = vpop.f32.mrf.mxu2 }
 0x27c   :  { %v1810_v25 = vpop.f32.mrf.mxu1 }
 0x27d   :  { %v3971_v36 = vpop.f32.mrf.mxu3  ;;  %v3975_v53 = vpop.permute.xlu1 %2211  ;;  %v4023_v7 = vadd.f32 %v1810_v25, %v1685_v0  ;;  %v4043_v0 = vadd.f32 %v3937_v18, %v3884_v40  ;;  %v4047_v25 = vadd.f32 %v3939_v1, %v3887_v3  ;;  %v4061_v40 = vadd.f32 %v3945_v16, %v3909_v22 }
 0x27e   :  { %4608 = vst [vmem:[#allocation12_spill] sm:$0xff] %v3975_v53  ;;  %v1696_v3 = vadd.f32 %v3947_v21, %v3817_v6  ;;  %v1926_v22 = vperm.slane %v4002_v17, 3  ;;  %v4078_v6 = vadd.f32 %v3959_v19, %v3839_v41  ;;  %v4082_v1 = vadd.f32 %v3961_v10, %v3841_v2 }
 0x27f   :  { %v2344_v35 = vpop.permute.xlu0 %2343  ;;  %v1688_v2 = vadd.f32 %v3969_v37, %v3857_v45  ;;  %v1689_v45 = vadd.f32 %v3971_v36, %v3859_v11 }
 0x280   :  { %vm4109_vm14 = vcmp.eq.s32.totalorder %v1926_v22, 1 }
 0x281   :  { %v1793_v23 = vpop.f32.mrf.mxu0 }
 0x283   :  { %v3977_v52 = vpop.f32.mrf.mxu2 }
 0x284   :  { %v1812_v12 = vpop.f32.mrf.mxu1  ;;  %v1694_v11 = vadd.f32 %v3977_v52, %v3879_v39 }
 0x285   :  { %v3979_v47 = vpop.f32.mrf.mxu3  ;;  %v2346_v54 = vpop.permute.xlu1 %2345  ;;  %v4086_v16 = vadd.f32 %v1812_v12, %v1691_v61 }
 0x286   :  { %v3996_v53 = vsel %vm903_vm4, %v2344_v35, %v2346_v54  ;;  %v3999_v24 = vsel %vm903_vm4, %v2346_v54, %v2348_v58  ;;  %v2354_v35 = vpop.permute.xlu2 %2353  ;;  %v1695_v52 = vadd.f32 %v3979_v47, %v3881_v14 }
 0x287   :  { %v2350_v42 = vpop.permute.xlu0 %2349  ;;  %4610 = vst [vmem:[#allocation14_spill] sm:$0xff] %v3996_v53  ;;  %v4012_v53 = vadd.f32 %v1791_v27, %v1684_v48  ;;  %v1687_v27 = vadd.f32 %v3935_v50, %v3865_v29  ;;  %v4057_v29 = vadd.f32 %v3943_v30, %v3906_v60  ;;  %v1927_v50 = vperm.slane %v4002_v17, 4 }
 0x288   :  { %v3991_v46 = vsel %vm903_vm4, %v2348_v58, %v2350_v42  ;;  %4611 = vst [vmem:[#allocation15_spill] sm:$0xff] %v3999_v24 }
 0x289   :  { %v3984_v8 = vpop.f32.mrf.mxu0  ;;  %4609 = vst [vmem:[#allocation13_spill] sm:$0xff] %v3991_v46  ;;  %v1935_v57 = vsel %vm4019_vm10, %v4012_v53, 0.0  ;;  %vm4103_vm13 = vcmp.eq.s32.totalorder %v1927_v50, 1 }
 0x28b   :  { %v3988_v34 = vpop.f32.mrf.mxu2 }
 0x28c   :  { %v3986_v44 = vpop.f32.mrf.mxu1 }
 0x28d   :  { %v3993_v38 = vpop.f32.mrf.mxu3  ;;  %v2352_v58 = vpop.permute.xlu1 %2351 }
 0x28e   :  { %v4028_v5 = vsel %vm903_vm4, %v2350_v42, %v2352_v58  ;;  %v4031_v20 = vsel %vm903_vm4, %v2352_v58, %v2354_v35  ;;  %v1690_v42 = vadd.f32 %v1581_v9, %v3795_v56  ;;  %v1936_v56 = vsel %vm4033_vm11, %v4023_v7, 0.0 }
 0x28f   :  { %v2356_v46 = vpop.permute.xlu0 %2355  ;;  %v1991_v9 = vmul.f32 %v1935_v57, %v1935_v57  ;;  %v1992_v30 = vmul.f32 %v1936_v56, %v1936_v56 }
 0x290   :  { %v4017_v33 = vsel %vm903_vm4, %v2354_v35, %v2356_v46  ;;  %v1686_v46 = vadd.f32 %v3933_v62, %v3862_v28  ;;  %v1925_v28 = vperm.slane %v4002_v17, 2  ;;  %v4072_v62 = vadd.f32 %v3955_v43, %v3928_v59  ;;  %v2360_v59 = vpop.permute.xlu2 %2359 }
 0x291   :  { %v4007_v51 = vpop.f32.mrf.mxu0  ;;  %v4084_v31 = vadd.f32 %v1793_v23, %v1690_v42  ;;  %v1928_v23 = vperm.slane %v4002_v17, 5  ;;  %v1959_v35 = vadd.f32 %v1936_v56, %v1935_v57  ;;  %v2015_v57 = vadd.f32 %v1992_v30, %v1991_v9 }
 0x292   :  { %vm4088_vm12 = vcmp.eq.s32.totalorder %v1925_v28, 1  ;;  %v4138_v9 = vadd.f32 %v3984_v8, %v1696_v3 }
 0x293   :  { %v4014_v54 = vpop.f32.mrf.mxu2  ;;  %v1941_v17 = vsel %vm4019_vm10, %v4084_v31, 0.0  ;;  %vm4133_vm15 = vcmp.eq.s32.totalorder %v1928_v23, 1 }
 0x294   :  { %v4010_v15 = vpop.f32.mrf.mxu1  ;;  %v1997_v22 = vmul.f32 %v1941_v17, %v1941_v17 }
 0x295   :  { %v4025_v24 = vpop.f32.mrf.mxu3  ;;  %v2358_v43 = vpop.permute.xlu1 %2357 }
 0x296   :  { %v4101_v12 = vsel %vm903_vm4, %v2358_v43, %v2360_v59 }
 0x297   :  { %v2362_v18 = vpop.permute.xlu0 %2361 }
 0x298   :  { %v4093_v41 = vsel %vm903_vm4, %v2360_v59, %v2362_v18  ;;  %v2366_v23 = vpop.permute.xlu2 %2365 }
 0x299   :  { %v1867_v60 = vpop.f32.mrf.mxu0 }
 0x29a   :  { %v4118_v37 = vadd.f32 %v1867_v60, %v1688_v2 }
 0x29b   :  { %v1829_v21 = vpop.f32.mrf.mxu2 }
 0x29c   :  { %v1886_v32 = vpop.f32.mrf.mxu1  ;;  %v4097_v19 = vadd.f32 %v1829_v21, %v1686_v46 }
 0x29d   :  { %v1848_v10 = vpop.f32.mrf.mxu3  ;;  %v4128_v36 = vadd.f32 %v1886_v32, %v1689_v45  ;;  %v1939_v32 = vsel %vm4103_vm13, %v4118_v37, 0.0 }
 0x29e   :  { %v4107_v42 = vadd.f32 %v1848_v10, %v1687_v27  ;;  %v1937_v46 = vsel %vm4088_vm12, %v4097_v19, 0.0  ;;  %v1942_v27 = vsel %vm4033_vm11, %v4086_v16, 0.0 }
 0x29f   :  { %v1960_v28 = vadd.f32 %v1959_v35, %v1937_v46  ;;  %v1993_v56 = vmul.f32 %v1937_v46, %v1937_v46  ;;  %v2368_v43 = vpop.permute.xlu0 %2367  ;;  %v1966_v2 = vadd.f32 %v1942_v27, %v1941_v17  ;;  %v1998_v39 = vmul.f32 %v1942_v27, %v1942_v27  ;;  %v2364_v17 = vpop.permute.xlu1 %2363 }
 0x2a0   :  { %v1938_v60 = vsel %vm4109_vm14, %v4107_v42, 0.0  ;;  %v4146_v35 = vadd.f32 %v3986_v44, %v1697_v55  ;;  %v4149_v46 = vsel %vm903_vm4, %v2366_v23, %v2368_v43  ;;  %v1940_v47 = vsel %vm4133_vm15, %v4128_v36, 0.0 }
 0x2a1   :  { %v2016_v59 = vadd.f32 %v2015_v57, %v1993_v56  ;;  %v1961_v30 = vadd.f32 %v1960_v28, %v1938_v60  ;;  %v1869_v21 = vpop.f32.mrf.mxu0  ;;  %v1994_v8 = vmul.f32 %v1938_v60, %v1938_v60  ;;  %4625 = vst [vmem:[#allocation16_spill] sm:$0xff] %v4149_v46  ;;  %v4158_v27 = vsel %vm903_vm4, %v2362_v18, %v2364_v17 }
 0x2a2   :  { %v4161_v44 = vsel %vm903_vm4, %v2364_v17, %v2366_v23  ;;  %v1947_v55 = vsel %vm4019_vm10, %v4138_v9, 0.0  ;;  %v2022_v60 = vadd.f32 %v1998_v39, %v1997_v22  ;;  %v1948_v23 = vsel %vm4033_vm11, %v4146_v35, 0.0 }
 0x2a3   :  { %v1831_v3 = vpop.f32.mrf.mxu2  ;;  %v1962_v45 = vadd.f32 %v1961_v30, %v1939_v32  ;;  %v2017_v28 = vadd.f32 %v2016_v59, %v1994_v8  ;;  %v1700_v30 = vadd.f32 %v3988_v34, %v3901_v63  ;;  %v1995_v17 = vmul.f32 %v1939_v32, %v1939_v32 }
 0x2a4   :  { %v1888_v10 = vpop.f32.mrf.mxu1  ;;  %v4152_v57 = vadd.f32 %v1831_v3, %v4043_v0  ;;  %v4171_v3 = vadd.f32 %v1869_v21, %v1694_v11  ;;  %v4181_v22 = vadd.f32 %v4007_v51, %v4078_v6  ;;  %v1701_v11 = vadd.f32 %v3993_v38, %v3903_v13 }
 0x2a5   :  { %v1850_v14 = vpop.f32.mrf.mxu3  ;;  %v1963_v0 = vadd.f32 %v1962_v45, %v1940_v47  ;;  %v4183_v63 = vadd.f32 %v1888_v10, %v1695_v52  ;;  %v4192_v51 = vadd.f32 %v4010_v15, %v4082_v1  ;;  %v2372_v10 = vpop.permute.xlu2 %2371  ;;  %v1996_v13 = vmul.f32 %v1940_v47, %v1940_v47 }
 0x2a6   :  { %v4167_v56 = vadd.f32 %v1850_v14, %v4047_v25  ;;  %v1943_v18 = vsel %vm4088_vm12, %v4152_v57, 0.0  ;;  %v2003_v25 = vmul.f32 %v1947_v55, %v1947_v55  ;;  %v1973_v14 = vadd.f32 %v1948_v23, %v1947_v55 }
 0x2a7   :  { %v1967_v59 = vadd.f32 %v1966_v2, %v1943_v18  ;;  %v1999_v8 = vmul.f32 %v1943_v18, %v1943_v18  ;;  %1964 = vadd.xlane.f32.xlu1 %v1963_v0  ;;  %v2018_v2 = vadd.f32 %v2017_v28, %v1995_v17  ;;  %v2374_v45 = vpop.permute.xlu0 %2373  ;;  %v2004_v0 = vmul.f32 %v1948_v23, %v1948_v23  ;;  %v2370_v28 = vpop.permute.xlu1 %2369 }
 0x2a8   :  { %v1944_v34 = vsel %vm4109_vm14, %v4167_v56, 0.0  ;;  %v1945_v6 = vsel %vm4103_vm13, %v4171_v3, 0.0  ;;  %v1953_v55 = vsel %vm4019_vm10, %v4181_v22, 0.0  ;;  %v1946_v15 = vsel %vm4133_vm15, %v4183_v63, 0.0 }
 0x2a9   :  { %v2023_v21 = vadd.f32 %v2022_v60, %v1999_v8  ;;  %v1968_v39 = vadd.f32 %v1967_v59, %v1944_v34  ;;  %v1872_v32 = vpop.f32.mrf.mxu0  ;;  %v2000_v46 = vmul.f32 %v1944_v34, %v1944_v34  ;;  %v4198_v60 = vsel %vm903_vm4, %v2372_v10, %v2374_v45 }
 0x2aa   :  { %4626 = vst [vmem:[#allocation17_spill] sm:$0xff] %v4198_v60  ;;  %v4210_v17 = vsel %vm903_vm4, %v2368_v43, %v2370_v28  ;;  %v2019_v34 = vadd.f32 %v2018_v2, %v1996_v13  ;;  %v2001_v49 = vmul.f32 %v1945_v6, %v1945_v6  ;;  %v4215_v10 = vadd.f32 %v1872_v32, %v1700_v30  ;;  %v4628_v30 = vld [vmem:[#allocation2_spill] sm:$0xff] }
 0x2ab   :  { %v1969_v18 = vadd.f32 %v1968_v39, %v1945_v6  ;;  %v1834_v38 = vpop.f32.mrf.mxu2  ;;  %v2024_v47 = vadd.f32 %v2023_v21, %v2000_v46  ;;  %v2029_v39 = vadd.f32 %v2004_v0, %v2003_v25  ;;  %v2009_v2 = vmul.f32 %v1953_v55, %v1953_v55  ;;  %v4629_v6 = vld [vmem:[#allocation3_spill] sm:$0xff] }
 0x2ac   :  { %v1891_v52 = vpop.f32.mrf.mxu1  ;;  %v4207_v1 = vadd.f32 %v1834_v38, %v4057_v29  ;;  %v1954_v29 = vsel %vm4033_vm11, %v4192_v51, 0.0  ;;  %v1706_v32 = vadd.f32 %v4014_v54, %v4628_v30  ;;  %v1707_v48 = vadd.f32 %v4025_v24, %v4629_v6 }
 0x2ad   :  { %v1853_v23 = vpop.f32.mrf.mxu3  ;;  %v1970_v8 = vadd.f32 %v1969_v18, %v1946_v15  ;;  %v4223_v43 = vadd.f32 %v1891_v52, %v1701_v11  ;;  %v2025_v18 = vadd.f32 %v2024_v47, %v2001_v49  ;;  %v1980_v38 = vadd.f32 %v1954_v29, %v1953_v55 }
 0x2ae   :  { %v4213_v59 = vadd.f32 %v1853_v23, %v4061_v40  ;;  %v1949_v60 = vsel %vm4088_vm12, %v4207_v1, 0.0  ;;  %v4627_v40 = vld [vmem:[#allocation7_spill] sm:$0xff]  ;;  %v2002_v28 = vmul.f32 %v1946_v15, %v1946_v15  ;;  %v2378_v23 = vpop.permute.xlu2 %2377 }
 0x2af   :  { %v1974_v46 = vadd.f32 %v1973_v14, %v1949_v60  ;;  %v2005_v21 = vmul.f32 %v1949_v60, %v1949_v60  ;;  %1971 = vadd.xlane.f32.xlu2 %v1970_v8  ;;  %2020 = vadd.xlane.f32.xlu1 %v2019_v34  ;;  %v1705_v25 = vadd.f32 %v4627_v40, %v3931_v26  ;;  %v2380_v13 = vpop.permute.xlu0 %2379  ;;  %v1951_v26 = vsel %vm4103_vm13, %v4215_v10, 0.0  ;;  %v2376_v47 = vpop.permute.xlu1 %2375 }
 0x2b0   :  { %v1950_v0 = vsel %vm4109_vm14, %v4213_v59, 0.0  ;;  %v2010_v60 = vmul.f32 %v1954_v29, %v1954_v29  ;;  %v1952_v24 = vsel %vm4133_vm15, %v4223_v43, 0.0  ;;  %v4249_v29 = vsel %vm903_vm4, %v2374_v45, %v2376_v47 }
 0x2b1   :  { %v2030_v11 = vadd.f32 %v2029_v39, %v2005_v21  ;;  %v1975_v52 = vadd.f32 %v1974_v46, %v1950_v0  ;;  %v1874_v14 = vpop.f32.mrf.mxu0  ;;  %v2006_v8 = vmul.f32 %v1950_v0, %v1950_v0  ;;  %v4241_v46 = vsel %vm903_vm4, %v2378_v23, %v2380_v13 }
 0x2b2   :  { %4630 = vst [vmem:[#allocation7_spill] sm:$0xff] %v4241_v46  ;;  %v4243_v55 = vadd.f32 %v1874_v14, %v1706_v32  ;;  %v4252_v21 = vsel %vm903_vm4, %v2376_v47, %v2378_v23  ;;  %v2026_v6 = vadd.f32 %v2025_v18, %v2002_v28  ;;  %v2007_v32 = vmul.f32 %v1951_v26, %v1951_v26 }
 0x2b3   :  { %v1836_v34 = vpop.f32.mrf.mxu2  ;;  %v1976_v39 = vadd.f32 %v1975_v52, %v1951_v26  ;;  %v2031_v40 = vadd.f32 %v2030_v11, %v2006_v8  ;;  %v2036_v52 = vadd.f32 %v2010_v60, %v2009_v2  ;;  %v2008_v61 = vmul.f32 %v1952_v24, %v1952_v24 }
 0x2b4   :  { %v1893_v54 = vpop.f32.mrf.mxu1  ;;  %v4246_v15 = vadd.f32 %v1836_v34, %v4072_v62 }
 0x2b5   :  { %v1855_v49 = vpop.f32.mrf.mxu3  ;;  %v1977_v0 = vadd.f32 %v1976_v39, %v1952_v24  ;;  %v4256_v46 = vadd.f32 %v1893_v54, %v1707_v48  ;;  %v2032_v18 = vadd.f32 %v2031_v40, %v2007_v32  ;;  %v2779_v40 = vld [vmem:[%s4582_s0 + $0xd8] sm:$0xff]  ;;  %v2781_v24 = vld [vmem:[%s4582_s0 + $0xc8] sm:$0xff] }
 0x2b6   :  { %v4254_v30 = vadd.f32 %v1855_v49, %v1705_v25  ;;  %v1955_v62 = vsel %vm4088_vm12, %v4246_v15, 0.0  ;;  %v1957_v25 = vsel %vm4103_vm13, %v4243_v55, 0.0 }
 0x2b7   :  { %v1981_v14 = vadd.f32 %v1980_v38, %v1955_v62  ;;  %v2011_v34 = vmul.f32 %v1955_v62, %v1955_v62  ;;  %1978 = vadd.xlane.f32.xlu0 %v1977_v0  ;;  %2027 = vadd.xlane.f32.xlu2 %v2026_v6  ;;  %v1958_v4 = vsel %vm4133_vm15, %v4256_v46, 0.0  ;;  %v2384_v38 = vpop.permute.xlu2 %2383  ;;  %v2013_v60 = vmul.f32 %v1957_v25, %v1957_v25  ;;  %v2382_v54 = vpop.permute.xlu1 %2381 }
 0x2b8   :  { %v1956_v45 = vsel %vm4109_vm14, %v4254_v30, 0.0  ;;  %v4271_v23 = vsel %vm903_vm4, %v2380_v13, %v2382_v54  ;;  %v4274_v58 = vsel %vm903_vm4, %v2382_v54, %v2384_v38  ;;  %v2014_v8 = vmul.f32 %v1958_v4, %v1958_v4  ;;  %v2780_v13 = vld [vmem:[%s4582_s0 + $0xd0] sm:$0xff]  ;;  %v2386_v6 = vpop.permute.xlu0 %2385 }
 0x2b9   :  { %v2037_v2 = vadd.f32 %v2036_v52, %v2011_v34  ;;  %v1982_v48 = vadd.f32 %v1981_v14, %v1956_v45  ;;  %v2012_v11 = vmul.f32 %v1956_v45, %v1956_v45  ;;  %v2033_v39 = vadd.f32 %v2032_v18, %v2008_v61 }
 0x2bb   :  { %v1983_v28 = vadd.f32 %v1982_v48, %v1957_v25  ;;  %v2038_v26 = vadd.f32 %v2037_v2, %v2012_v11 }
 0x2bd   :  { %v1984_v47 = vadd.f32 %v1983_v28, %v1958_v4  ;;  %v2039_v49 = vadd.f32 %v2038_v26, %v2013_v60 }
 0x2bf   :  { %2034 = vadd.xlane.f32.xlu0 %v2033_v39  ;;  %1985 = vadd.xlane.f32.xlu2 %v1984_v47  ;;  %v2040_v50 = vadd.f32 %v2039_v49, %v2014_v8  ;;  %v2388_v0 = vpop.permute.xlu1 %2387  ;;  %v2390_v52 = vpop.permute.xlu2 %2389 }
 0x2c0   :  { %v4290_v14 = vpop.permute.xlu0 %2391  ;;  %v4307_v49 = vsel %vm903_vm4, %v2386_v6, %v2388_v0 }
 0x2c1   :  { %2041 = vadd.xlane.f32.xlu1 %v2040_v50  ;;  %4631 = vst [vmem:[#allocation2_spill] sm:$0xff] %v4290_v14  ;;  %v4304_v47 = vsel %vm903_vm4, %v2390_v52, %v4290_v14  ;;  %v4310_v50 = vsel %vm903_vm4, %v2388_v0, %v2390_v52  ;;  %v4640_v14 = vld [vmem:[#allocation13_spill] sm:$0xff] }
 0x2c2   :  { %4632 = vst [vmem:[#allocation3_spill] sm:$0xff] %v4304_v47  ;;  %v4638_v47 = vld [vmem:[#allocation14_spill] sm:$0xff] }
 0x2c3   :  { %4633 = vst [vmem:[#allocation18_spill] sm:$0xff] %v4307_v49 }
 0x2c4   :  { %4634 = vst [vmem:[#allocation19_spill] sm:$0xff] %v4310_v50 }
 0x2d3   :  { %2397 = vrot.lane.b32.xlu0 %v2779_v40, %s2785_s28 }
 0x2d7   :  { %2395 = vrot.lane.b32.xlu2 %v2780_v13, %s2785_s28 }
 0x2da   :  { %2393 = vrot.lane.b32.xlu1 %v2781_v24, %s2785_s28 }
 0x31a   :  { %v1965_v62 = vpop.xlane.xlu1 %1964 }
 0x31b   :  { %v4288_v32 = vmul.f32 0.001953125, %v1965_v62 }
 0x31d   :  { %v2047_v25 = vmul.f32 %v4288_v32, %v4288_v32  ;;  %v2055_v40 = vsub.f32 %v4012_v53, %v4288_v32  ;;  %v2056_v13 = vsub.f32 %v4023_v7, %v4288_v32  ;;  %v2057_v24 = vsub.f32 %v4097_v19, %v4288_v32 }
 0x31e   :  { %v2058_v6 = vsub.f32 %v4107_v42, %v4288_v32  ;;  %v2059_v53 = vsub.f32 %v4118_v37, %v4288_v32  ;;  %v2060_v7 = vsub.f32 %v4128_v36, %v4288_v32 }
 0x322   :  { %v1972_v34 = vpop.xlane.xlu2 %1971  ;;  %v2021_v45 = vpop.xlane.xlu1 %2020 }
 0x323   :  { %v2043_v2 = vmul.f32 0.001953125, %v2021_v45  ;;  %v4294_v11 = vmul.f32 0.001953125, %v1972_v34 }
 0x325   :  { %v2051_v48 = vsub.f32 %v2043_v2, %v2047_v25  ;;  %v2048_v60 = vmul.f32 %v4294_v11, %v4294_v11 }
 0x327   :  { %v2079_v18 = vadd.f32 1e-05, %v2051_v48 }
 0x329   :  { %2746 = vrsqrt.f32 %v2079_v18  ;;  %vm2089_vm1 = vweird.f32 %v2079_v18 }
 0x32a   :  { %v1979_v4 = vpop.xlane.xlu0 %1978  ;;  %v2028_v38 = vpop.xlane.xlu2 %2027 }
 0x32b   :  { %v2044_v28 = vmul.f32 0.001953125, %v2028_v38  ;;  %v4298_v54 = vmul.f32 0.001953125, %v1979_v4 }
 0x32d   :  { %v2052_v26 = vsub.f32 %v2044_v28, %v2048_v60  ;;  %v2049_v0 = vmul.f32 %v4298_v54, %v4298_v54 }
 0x32f   :  { %v2747_v61 = vpop.eup %2746  ;;  %v4300_v8 = vadd.f32 1e-05, %v2052_v26 }
 0x330   :  { %v2084_v39 = vmul.f32 %v2747_v61, %v2079_v18  ;;  %vm2090_vm0 = vweird.f32 %v2747_v61  ;;  %v4635_v18 = vld [vmem:[#allocation4_spill] sm:$0xff] }
 0x331   :  { %2748 = vrsqrt.f32 %v4300_v8  ;;  %vm2091_vm2 = vmor %vm2089_vm1, %vm2090_vm0  ;;  %vm2099_vm3 = vweird.f32 %v4300_v8 }
 0x332   :  { %v2085_v62 = vmul.f32 %v2747_v61, %v2084_v39  ;;  %v2035_v34 = vpop.xlane.xlu0 %2034  ;;  %v1986_v45 = vpop.xlane.xlu2 %1985 }
 0x333   :  { %v2045_v52 = vmul.f32 0.001953125, %v2035_v34  ;;  %v4323_v25 = vmul.f32 0.001953125, %v1986_v45 }
 0x334   :  { %v2086_v2 = vmul.f32 0.5, %v2085_v62  ;;  %v2042_v48 = vpop.xlane.xlu1 %2041 }
 0x335   :  { %v2053_v38 = vsub.f32 %v2045_v52, %v2049_v0  ;;  %v2050_v60 = vmul.f32 %v4323_v25, %v4323_v25  ;;  %v2046_v36 = vmul.f32 0.001953125, %v2042_v48 }
 0x336   :  { %v2087_v28 = vsub.f32 1.5, %v2086_v2 }
 0x337   :  { %v2749_v32 = vpop.eup %2748  ;;  %v4343_v62 = vadd.f32 1e-05, %v2053_v38  ;;  %v2054_v52 = vsub.f32 %v2046_v36, %v2050_v60 }
 0x338   :  { %v2088_v34 = vmul.f32 %v2747_v61, %v2087_v28  ;;  %v2094_v45 = vmul.f32 %v2749_v32, %v4300_v8  ;;  %vm2100_vm5 = vweird.f32 %v2749_v32 }
 0x339   :  { %2750 = vrsqrt.f32 %v4343_v62  ;;  %v4356_v39 = vadd.f32 1e-05, %v2054_v52  ;;  %vm2101_vm12 = vmor %vm2099_vm3, %vm2100_vm5  ;;  %vm2109_vm5 = vweird.f32 %v4343_v62 }
 0x33a   :  { %v2092_v38 = vsel %vm2091_vm2, %v2747_v61, %v2088_v34  ;;  %v2095_v28 = vmul.f32 %v2749_v32, %v2094_v45 }
 0x33b   :  { %v2123_v0 = vmul.f32 %v2092_v38, %v2055_v40  ;;  %v2124_v60 = vmul.f32 %v2092_v38, %v2056_v13  ;;  %v2125_v36 = vmul.f32 %v2092_v38, %v2057_v24  ;;  %v2126_v26 = vmul.f32 %v2092_v38, %v2058_v6  ;;  %v4636_v24 = vld [vmem:[#allocation10_spill] sm:$0xff] }
 0x33c   :  { %v2127_v37 = vmul.f32 %v2092_v38, %v2059_v53  ;;  %v2128_v2 = vmul.f32 %v2092_v38, %v2060_v7  ;;  %v2096_v4 = vmul.f32 0.5, %v2095_v28  ;;  %2752 = vrsqrt.f32 %v4356_v39 }
 0x33d   :  { %v2171_v42 = vmul.f32 %v4635_v18, %v2123_v0  ;;  %v2172_v48 = vmul.f32 %v4635_v18, %v2124_v60  ;;  %v2173_v19 = vmul.f32 %v4635_v18, %v2125_v36  ;;  %v2174_v61 = vmul.f32 %v4635_v18, %v2126_v26 }
 0x33e   :  { %v2175_v34 = vmul.f32 %v4635_v18, %v2127_v37  ;;  %v2176_v45 = vmul.f32 %v4635_v18, %v2128_v2  ;;  %v2097_v40 = vsub.f32 1.5, %v2096_v4 }
 0x33f   :  { %v4365_v13 = vpop.eup %2750  ;;  %v2219_v6 = vadd.f32 %v4636_v24, %v2171_v42  ;;  %v2220_v53 = vadd.f32 %v4636_v24, %v2172_v48  ;;  %v2221_v7 = vadd.f32 %v4636_v24, %v2173_v19  ;;  %v2222_v0 = vadd.f32 %v4636_v24, %v2174_v61 }
 0x340   :  { %v2223_v52 = vadd.f32 %v4636_v24, %v2175_v34  ;;  %v2224_v26 = vadd.f32 %v4636_v24, %v2176_v45  ;;  %v2098_v37 = vmul.f32 %v2749_v32, %v2097_v40  ;;  %v2104_v4 = vmul.f32 %v4365_v13, %v4343_v62 }
 0x341   :  { %vm2243_vm6 = vcmp.ge.f32.partialorder %v2219_v6, 0.0  ;;  %vm2244_vm7 = vcmp.ge.f32.partialorder %v2220_v53, 0.0  ;;  %vm2245_vm8 = vcmp.ge.f32.partialorder %v2221_v7, 0.0  ;;  %vm2246_vm9 = vcmp.ge.f32.partialorder %v2222_v0, 0.0 }
 0x342   :  { %vm2247_vm10 = vcmp.ge.f32.partialorder %v2223_v52, 0.0  ;;  %vm2248_vm11 = vcmp.ge.f32.partialorder %v2224_v26, 0.0  ;;  %v2267_v42 = vmul.f32 0.2, %v2219_v6  ;;  %v2268_v2 = vmul.f32 0.2, %v2220_v53  ;;  %v4378_v28 = vpop.eup %2752 }
 0x343   :  { %v2269_v19 = vmul.f32 0.2, %v2221_v7  ;;  %v2270_v18 = vmul.f32 0.2, %v2222_v0  ;;  %v2271_v48 = vmul.f32 0.2, %v2223_v52  ;;  %v2102_v38 = vsel %vm2101_vm12, %v2749_v32, %v2098_v37 }
 0x344   :  { %v2272_v60 = vmul.f32 0.2, %v2224_v26  ;;  %v2291_v36 = vsel %vm2243_vm6, %v2219_v6, %v2267_v42  ;;  %v2292_v61 = vsel %vm2244_vm7, %v2220_v53, %v2268_v2  ;;  %v4637_v34 = vsub.f32 %v4084_v31, %v4294_v11  ;;  %v4639_v37 = vld [vmem:[#allocation15_spill] sm:$0xff] }
 0x345   :  { %v2293_v40 = vsel %vm2245_vm8, %v2221_v7, %v2269_v19  ;;  %v2294_v8 = vsel %vm2246_vm9, %v2222_v0, %v2270_v18  ;;  %v2295_v24 = vsel %vm2247_vm10, %v2223_v52, %v2271_v48  ;;  %v2448_v50 = vadd.f32 %v4638_v47, %v2291_v36  ;;  %v4647_v19 = vld [vmem:[#allocation8_spill] sm:$0xff] }
 0x346   :  { %v2129_v45 = vmul.f32 %v2102_v38, %v4637_v34  ;;  %v2296_v32 = vsel %vm2248_vm11, %v2224_v26, %v2272_v60  ;;  %v2449_v49 = vadd.f32 %v4639_v37, %v2292_v61  ;;  %v2450_v6 = vadd.f32 %v4640_v14, %v2293_v40  ;;  %v4646_v26 = vld [vmem:[#allocation9_spill] sm:$0xff] }
 0x347   :  { %v2451_v53 = vadd.f32 %v4028_v5, %v2294_v8  ;;  %v2452_v42 = vadd.f32 %v4031_v20, %v2295_v24  ;;  %v2453_v31 = vadd.f32 %v4017_v33, %v2296_v32  ;;  %2472 = vst [vmem:[%s4587_s5] sm:$0xff] %v2448_v50  ;;  %v4641_v7 = vsub.f32 %v4086_v16, %v4294_v11 }
 0x348   :  { %v4642_v0 = vsub.f32 %v4152_v57, %v4294_v11  ;;  %2473 = vst [vmem:[%s4587_s5 + $0x8] sm:$0xff] %v2449_v49  ;;  %v4643_v5 = vsub.f32 %v4167_v56, %v4294_v11  ;;  %v4644_v20 = vsub.f32 %v4171_v3, %v4294_v11  ;;  %v4645_v16 = vsub.f32 %v4183_v63, %v4294_v11 }
 0x349   :  { %v2130_v47 = vmul.f32 %v2102_v38, %v4641_v7  ;;  %v2177_v2 = vmul.f32 %v4646_v26, %v2129_v45  ;;  %2474 = vst [vmem:[%s4587_s5 + $0x10] sm:$0xff] %v2450_v6  ;;  %v2105_v56 = vmul.f32 %v4365_v13, %v2104_v4  ;;  %vm2110_vm13 = vweird.f32 %v4365_v13 }
 0x34a   :  { %v2131_v52 = vmul.f32 %v2102_v38, %v4642_v0  ;;  %v2132_v33 = vmul.f32 %v2102_v38, %v4643_v5  ;;  %v2133_v14 = vmul.f32 %v2102_v38, %v4644_v20  ;;  %v2134_v50 = vmul.f32 %v2102_v38, %v4645_v16  ;;  %2475 = vst [vmem:[%s4587_s5 + $0x18] sm:$0xff] %v2451_v53  ;;  %vm2111_vm6 = vmor %vm2109_vm5, %vm2110_vm13 }
 0x34b   :  { %v2178_v57 = vmul.f32 %v4646_v26, %v2130_v47  ;;  %v2225_v18 = vadd.f32 %v4647_v19, %v2177_v2  ;;  %2476 = vst [vmem:[%s4587_s5 + $0x20] sm:$0xff] %v2452_v42  ;;  %v2106_v38 = vmul.f32 0.5, %v2105_v56  ;;  %v2114_v60 = vmul.f32 %v4378_v28, %v4356_v39 }
 0x34c   :  { %v2179_v49 = vmul.f32 %v4646_v26, %v2131_v52  ;;  %v2180_v3 = vmul.f32 %v4646_v26, %v2132_v33  ;;  %v2181_v63 = vmul.f32 %v4646_v26, %v2133_v14  ;;  %v2182_v11 = vmul.f32 %v4646_v26, %v2134_v50  ;;  %2477 = vst [vmem:[%s4587_s5 + $0x28] sm:$0xff] %v2453_v31  ;;  %v4648_v14 = vld [vmem:[#allocation16_spill] sm:$0xff] }
 0x34d   :  { %v2226_v4 = vadd.f32 %v4647_v19, %v2178_v57  ;;  %vm2249_vm14 = vcmp.ge.f32.partialorder %v2225_v18, 0.0  ;;  %v2273_v45 = vmul.f32 0.2, %v2225_v18  ;;  %v2107_v7 = vsub.f32 1.5, %v2106_v38  ;;  %v4654_v38 = vld [vmem:[#allocation12_spill] sm:$0xff] }
 0x34e   :  { %v2227_v48 = vadd.f32 %v4647_v19, %v2179_v49  ;;  %v2228_v36 = vadd.f32 %v4647_v19, %v2180_v3  ;;  %v2229_v61 = vadd.f32 %v4647_v19, %v2181_v63  ;;  %v2230_v34 = vadd.f32 %v4647_v19, %v2182_v11  ;;  %v4653_v19 = vld [vmem:[#allocation6_spill] sm:$0xff] }
 0x34f   :  { %vm2250_vm15 = vcmp.ge.f32.partialorder %v2226_v4, 0.0  ;;  %v2274_v40 = vmul.f32 0.2, %v2226_v4  ;;  %v2297_v6 = vsel %vm2249_vm14, %v2225_v18, %v2273_v45  ;;  %v2071_v50 = vsub.f32 %v4215_v10, %v4298_v54 }
 0x350   :  { %vm2251_vm0 = vcmp.ge.f32.partialorder %v2227_v48, 0.0  ;;  %vm2252_vm1 = vcmp.ge.f32.partialorder %v2228_v36, 0.0  ;;  %vm2253_vm2 = vcmp.ge.f32.partialorder %v2229_v61, 0.0  ;;  %vm2254_vm3 = vcmp.ge.f32.partialorder %v2230_v34, 0.0 }
 0x351   :  { %v2275_v8 = vmul.f32 0.2, %v2227_v48  ;;  %v2276_v24 = vmul.f32 0.2, %v2228_v36  ;;  %v2277_v32 = vmul.f32 0.2, %v2229_v61  ;;  %v2298_v53 = vsel %vm2250_vm15, %v2226_v4, %v2274_v40 }
 0x352   :  { %v2278_v37 = vmul.f32 0.2, %v2230_v34  ;;  %v2454_v31 = vadd.f32 %v4101_v12, %v2297_v6  ;;  %v2455_v5 = vadd.f32 %v4093_v41, %v2298_v53  ;;  %v2108_v41 = vmul.f32 %v4365_v13, %v2107_v7 }
 0x353   :  { %v2299_v42 = vsel %vm2251_vm0, %v2227_v48, %v2275_v8  ;;  %v2300_v47 = vsel %vm2252_vm1, %v2228_v36, %v2276_v24  ;;  %v2301_v0 = vsel %vm2253_vm2, %v2229_v61, %v2277_v32  ;;  %v2074_v10 = vsub.f32 %v4192_v51, %v4323_v25 }
 0x354   :  { %v2302_v52 = vsel %vm2254_vm3, %v2230_v34, %v2278_v37  ;;  %v2456_v33 = vadd.f32 %v4158_v27, %v2299_v42  ;;  %v2457_v20 = vadd.f32 %v4161_v44, %v2300_v47  ;;  %v2458_v16 = vadd.f32 %v4648_v14, %v2301_v0  ;;  %2478 = vst [vmem:[%s4587_s5 + $0x30] sm:$0xff] %v2454_v31 }
 0x355   :  { %v2459_v12 = vadd.f32 %v4210_v17, %v2302_v52  ;;  %2479 = vst [vmem:[%s4587_s5 + $0x38] sm:$0xff] %v2455_v5  ;;  %v2115_v27 = vmul.f32 %v4378_v28, %v2114_v60  ;;  %v2072_v44 = vsub.f32 %v4223_v43, %v4298_v54  ;;  %v2073_v17 = vsub.f32 %v4181_v22, %v4323_v25 }
 0x356   :  { %2480 = vst [vmem:[%s4587_s5 + $0x40] sm:$0xff] %v2456_v33  ;;  %v2075_v62 = vsub.f32 %v4246_v15, %v4323_v25  ;;  %v2112_v26 = vsel %vm2111_vm6, %v4365_v13, %v2108_v41  ;;  %v2076_v43 = vsub.f32 %v4254_v30, %v4323_v25  ;;  %v2077_v57 = vsub.f32 %v4243_v55, %v4323_v25  ;;  %v2394_v41 = vpop.permute.xlu1 %2393 }
 0x357   :  { %2481 = vst [vmem:[%s4587_s5 + $0x48] sm:$0xff] %v2457_v20  ;;  %v2116_v2 = vmul.f32 0.5, %v2115_v27  ;;  %v4649_v22 = vsub.f32 %v4138_v9, %v4298_v54  ;;  %v4650_v15 = vsub.f32 %v4146_v35, %v4298_v54  ;;  %v4651_v13 = vsub.f32 %v4207_v1, %v4298_v54  ;;  %v2396_v27 = vpop.permute.xlu2 %2395 }
 0x358   :  { %2482 = vst [vmem:[%s4587_s5 + $0x50] sm:$0xff] %v2458_v16  ;;  %v4652_v30 = vsub.f32 %v4213_v59, %v4298_v54  ;;  %v2139_v63 = vmul.f32 %v2112_v26, %v2071_v50  ;;  %v2140_v11 = vmul.f32 %v2112_v26, %v2072_v44  ;;  %vm2120_vm7 = vweird.f32 %v4378_v28  ;;  %v4656_v50 = vld [vmem:[#allocation7_spill] sm:$0xff] }
 0x359   :  { %v2135_v51 = vmul.f32 %v2112_v26, %v4649_v22  ;;  %v2136_v49 = vmul.f32 %v2112_v26, %v4650_v15  ;;  %v2137_v56 = vmul.f32 %v2112_v26, %v4651_v13  ;;  %2483 = vst [vmem:[%s4587_s5 + $0x58] sm:$0xff] %v2459_v12  ;;  %v2117_v9 = vsub.f32 1.5, %v2116_v2  ;;  %v2398_v22 = vpop.permute.xlu0 %2397 }
 0x35a   :  { %v2138_v3 = vmul.f32 %v2112_v26, %v4652_v30  ;;  %v2187_v59 = vmul.f32 %v4653_v19, %v2139_v63  ;;  %v2188_v54 = vmul.f32 %v4653_v19, %v2140_v11  ;;  %vm2119_vm8 = vweird.f32 %v4356_v39  ;;  %v4657_v26 = vld [vmem:[#allocation5_spill] sm:$0xff] }
 0x35b   :  { %v2183_v35 = vmul.f32 %v4653_v19, %v2135_v51  ;;  %v2184_v18 = vmul.f32 %v4653_v19, %v2136_v49  ;;  %v2185_v1 = vmul.f32 %v4653_v19, %v2137_v56  ;;  %v2118_v48 = vmul.f32 %v4378_v28, %v2117_v9  ;;  %vm2121_vm9 = vmor %vm2119_vm8, %vm2120_vm7  ;;  %v4658_v51 = vld [vmem:[#allocation11_spill] sm:$0xff]  ;;  %v4659_v49 = vld [vmem:[#allocation2_spill] sm:$0xff] }
 0x35c   :  { %v2186_v4 = vmul.f32 %v4653_v19, %v2138_v3  ;;  %v2235_v45 = vadd.f32 %v4654_v38, %v2187_v59  ;;  %v2236_v40 = vadd.f32 %v4654_v38, %v2188_v54  ;;  %v2078_v24 = vsub.f32 %v4256_v46, %v4323_v25  ;;  %v4655_v46 = vld [vmem:[#allocation17_spill] sm:$0xff]  ;;  %v4660_v59 = vld [vmem:[#allocation18_spill] sm:$0xff] }
 0x35d   :  { %v2231_v60 = vadd.f32 %v4654_v38, %v2183_v35  ;;  %v2232_v36 = vadd.f32 %v4654_v38, %v2184_v18  ;;  %v2233_v61 = vadd.f32 %v4654_v38, %v2185_v1  ;;  %v2122_v8 = vsel %vm2121_vm9, %v4378_v28, %v2118_v48 }
 0x35e   :  { %v2234_v34 = vadd.f32 %v4654_v38, %v2186_v4  ;;  %vm2259_vm14 = vcmp.ge.f32.partialorder %v2235_v45, 0.0  ;;  %vm2260_vm15 = vcmp.ge.f32.partialorder %v2236_v40, 0.0  ;;  %v2283_v53 = vmul.f32 0.2, %v2235_v45 }
 0x35f   :  { %vm2255_vm10 = vcmp.ge.f32.partialorder %v2231_v60, 0.0  ;;  %vm2256_vm11 = vcmp.ge.f32.partialorder %v2232_v36, 0.0  ;;  %vm2257_vm12 = vcmp.ge.f32.partialorder %v2233_v61, 0.0  ;;  %v2279_v39 = vmul.f32 0.2, %v2231_v60 }
 0x360   :  { %vm2258_vm13 = vcmp.ge.f32.partialorder %v2234_v34, 0.0  ;;  %v2280_v32 = vmul.f32 0.2, %v2232_v36  ;;  %v2281_v37 = vmul.f32 0.2, %v2233_v61  ;;  %v2141_v42 = vmul.f32 %v2122_v8, %v2073_v17 }
 0x361   :  { %v2282_v6 = vmul.f32 0.2, %v2234_v34  ;;  %v2284_v31 = vmul.f32 0.2, %v2236_v40  ;;  %v2303_v7 = vsel %vm2255_vm10, %v2231_v60, %v2279_v39  ;;  %v2142_v0 = vmul.f32 %v2122_v8, %v2074_v10  ;;  %v4661_v60 = vld [vmem:[#allocation19_spill] sm:$0xff] }
 0x362   :  { %v2304_v47 = vsel %vm2256_vm11, %v2232_v36, %v2280_v32  ;;  %v2305_v28 = vsel %vm2257_vm12, %v2233_v61, %v2281_v37  ;;  %v2307_v5 = vsel %vm2259_vm14, %v2235_v45, %v2283_v53  ;;  %v2460_v33 = vadd.f32 %v4655_v46, %v2303_v7  ;;  %v4662_v61 = vld [vmem:[#allocation3_spill] sm:$0xff] }
 0x363   :  { %v2306_v52 = vsel %vm2258_vm13, %v2234_v34, %v2282_v6  ;;  %v2308_v20 = vsel %vm2260_vm15, %v2236_v40, %v2284_v31  ;;  %v2461_v14 = vadd.f32 %v4249_v29, %v2304_v47  ;;  %v2462_v16 = vadd.f32 %v4252_v21, %v2305_v28 }
 0x364   :  { %v2463_v12 = vadd.f32 %v4656_v50, %v2306_v52  ;;  %v2464_v44 = vadd.f32 %v4271_v23, %v2307_v5  ;;  %v2465_v17 = vadd.f32 %v4274_v58, %v2308_v20  ;;  %2484 = vst [vmem:[%s4587_s5 + $0x60] sm:$0xff] %v2460_v33  ;;  %v2143_v10 = vmul.f32 %v2122_v8, %v2075_v62 }
 0x365   :  { %v2189_v2 = vmul.f32 %v4657_v26, %v2141_v42  ;;  %2485 = vst [vmem:[%s4587_s5 + $0x68] sm:$0xff] %v2461_v14  ;;  %v2190_v29 = vmul.f32 %v4657_v26, %v2142_v0  ;;  %v2144_v21 = vmul.f32 %v2122_v8, %v2076_v43  ;;  %v2145_v23 = vmul.f32 %v2122_v8, %v2077_v57 }
 0x366   :  { %v2146_v58 = vmul.f32 %v2122_v8, %v2078_v24  ;;  %2486 = vst [vmem:[%s4587_s5 + $0x70] sm:$0xff] %v2462_v16  ;;  %v2191_v62 = vmul.f32 %v4657_v26, %v2143_v10  ;;  %v2421_v13 = vsel %vm903_vm4, %v4659_v49, %v2394_v41  ;;  %v2422_v56 = vsel %vm903_vm4, %v2394_v41, %v2396_v27 }
 0x367   :  { %v2237_v15 = vadd.f32 %v4658_v51, %v2189_v2  ;;  %2487 = vst [vmem:[%s4587_s5 + $0x78] sm:$0xff] %v2463_v12  ;;  %v2238_v55 = vadd.f32 %v4658_v51, %v2190_v29  ;;  %v2192_v25 = vmul.f32 %v4657_v26, %v2144_v21  ;;  %v2193_v43 = vmul.f32 %v4657_v26, %v2145_v23 }
 0x368   :  { %v2194_v57 = vmul.f32 %v4657_v26, %v2146_v58  ;;  %2488 = vst [vmem:[%s4587_s5 + $0x80] sm:$0xff] %v2464_v44  ;;  %v2239_v30 = vadd.f32 %v4658_v51, %v2191_v62  ;;  %v2423_v63 = vsel %vm903_vm4, %v2396_v27, %v2398_v22 }
 0x369   :  { %vm2261_vm0 = vcmp.ge.f32.partialorder %v2237_v15, 0.0  ;;  %v2285_v3 = vmul.f32 0.2, %v2237_v15  ;;  %2489 = vst [vmem:[%s4587_s5 + $0x88] sm:$0xff] %v2465_v17  ;;  %vm2262_vm1 = vcmp.ge.f32.partialorder %v2238_v55, 0.0  ;;  %v2240_v9 = vadd.f32 %v4658_v51, %v2192_v25 }
 0x36a   :  { %v2286_v11 = vmul.f32 0.2, %v2238_v55  ;;  %v2241_v19 = vadd.f32 %v4658_v51, %v2193_v43  ;;  %vm2263_vm2 = vcmp.ge.f32.partialorder %v2239_v30, 0.0  ;;  %v2287_v35 = vmul.f32 0.2, %v2239_v30 }
 0x36b   :  { %v2309_v18 = vsel %vm2261_vm0, %v2237_v15, %v2285_v3  ;;  %v2242_v1 = vadd.f32 %v4658_v51, %v2194_v57  ;;  %vm2264_vm3 = vcmp.ge.f32.partialorder %v2240_v9, 0.0  ;;  %v2288_v48 = vmul.f32 0.2, %v2240_v9 }
 0x36c   :  { %v2310_v4 = vsel %vm2262_vm1, %v2238_v55, %v2286_v11  ;;  %v2466_v54 = vadd.f32 %v4660_v59, %v2309_v18  ;;  %v2311_v38 = vsel %vm2263_vm2, %v2239_v30, %v2287_v35  ;;  %vm2265_vm4 = vcmp.ge.f32.partialorder %v2241_v19, 0.0 }
 0x36d   :  { %v2467_v36 = vadd.f32 %v4661_v60, %v2310_v4  ;;  %vm2266_vm5 = vcmp.ge.f32.partialorder %v2242_v1, 0.0  ;;  %v2468_v34 = vadd.f32 %v4662_v61, %v2311_v38  ;;  %v2312_v45 = vsel %vm2264_vm3, %v2240_v9, %v2288_v48 }
 0x36e   :  { %2490 = vst [vmem:[%s4587_s5 + $0x90] sm:$0xff] %v2466_v54  ;;  %v2289_v40 = vmul.f32 0.2, %v2241_v19  ;;  %v2290_v8 = vmul.f32 0.2, %v2242_v1  ;;  %v2469_v24 = vadd.f32 %v2421_v13, %v2312_v45 }
 0x36f   :  { %2491 = vst [vmem:[%s4587_s5 + $0x98] sm:$0xff] %v2467_v36 }
 0x370   :  { %2492 = vst [vmem:[%s4587_s5 + $0xa0] sm:$0xff] %v2468_v34  ;;  %v2313_v39 = vsel %vm2265_vm4, %v2241_v19, %v2289_v40  ;;  %v2314_v32 = vsel %vm2266_vm5, %v2242_v1, %v2290_v8 }
 0x371   :  { %2493 = vst [vmem:[%s4587_s5 + $0xa8] sm:$0xff] %v2469_v24  ;;  %v2470_v37 = vadd.f32 %v2422_v56, %v2313_v39  ;;  %v2471_v6 = vadd.f32 %v2423_v63, %v2314_v32 }
 0x373   :  { %2494 = vst [vmem:[%s4587_s5 + $0xb0] sm:$0xff] %v2470_v37 }
 0x374   :  { %2495 = vst [vmem:[%s4587_s5 + $0xb8] sm:$0xff] %v2471_v6 }

</bundles_post_ra>
